<compile_context>
chip_gen: v5e
topology: v5e:2x2
jax: 0.10.0
libtpu: 0.0.40
codegen_flags: <defaults>
</compile_context>

<pallas_src>
import jax
import jax.numpy as jnp
from jax import lax
from jax.experimental import pallas as pl
from jax.experimental.pallas import tpu as pltpu  # noqa: F401  (TPU-specific tuning hooks)


# ----------------------------------------------------------------------------- #
# One GATConv(heads=H, concat=False) attention block on resident VMEM values
# ----------------------------------------------------------------------------- #
def _gat_attention(x, adj_bias, w_all_bf16, a_dst_blk, a_src_blk, num_heads, head_dim):
    """x: (N,Fin) f32; adj_bias: (N,N) f32 additive mask (0 edge j->i, -1e30 otherwise);
    w_all_bf16: (Fin, H*C) bf16; a_dst_blk: (H*C, H) f32; a_src_blk: (H, H*C) f32.
    Returns (N, C) f32 = SUM over heads of softmax(leaky_relu(logits)+mask) @ xh_h
    (the 1/H mean and bias are folded into the caller's scale/shift epilogue)."""
    H, C = num_heads, head_dim

    # Batched projection for all heads: one MXU call instead of H (bf16 in, f32 acc).
    xh_all = jnp.dot(x.astype(jnp.bfloat16), w_all_bf16,
                     preferred_element_type=jnp.float32)              # (N, H*C)

    # All-head attention coefficients in two matmuls (block-diagonal att matrices).
    alpha_dst = jnp.dot(xh_all, a_dst_blk,
                        preferred_element_type=jnp.float32)           # (N, H)
    alpha_src = lax.dot_general(a_src_blk, xh_all,
                                (((1,), (1,)), ((), ())),
                                preferred_element_type=jnp.float32)   # (H, N)

    xh_bf = xh_all.astype(jnp.bfloat16)

    acc = None
    for h in range(H):                         # unrolled at trace time (H <= 8)
        d_col = alpha_dst[:, h:h + 1]          # (N, 1): <xh_h[i], a_dst_h>
        s_row = alpha_src[h:h + 1, :]          # (1, N): <xh_h[j], a_src_h>
        logits = d_col + s_row                 # (N, N), edge j -> i at [i, j]
        logits = jnp.where(logits > 0, logits, 0.2 * logits)    # leaky_relu(0.2)
        masked = logits + adj_bias             # additive mask: one add, no select
        m = jnp.max(masked, axis=-1, keepdims=True)
        p = jnp.exp(masked - m)                # masked entries underflow to exactly 0
        denom = jnp.sum(p, axis=-1, keepdims=True)
        attn = p * pl.reciprocal(denom, approx=True)             # EUP, not VPU divide
        xh_h = xh_bf[:, h * C:(h + 1) * C]     # (N, C) this head's projected features
        contrib = jnp.dot(attn.astype(jnp.bfloat16), xh_h,
                          preferred_element_type=jnp.float32)    # (N, C)
        acc = contrib if acc is None else acc + contrib
    return acc


# ----------------------------------------------------------------------------- #
# Fully fused GATModel forward kernel (all layers in one pallas_call, no grid)
# ----------------------------------------------------------------------------- #
def _build_model_kernel(layer_meta):
    """layer_meta: tuple of (num_heads, head_dim, has_relu) per GATConv layer."""
    def kernel(*args):
        x_ref, adjb_ref = args[0], args[1]
        out_ref = args[-1]
        params = args[2:-1]

        adj_bias = adjb_ref[...]               # resident for the whole forward
        h_val = x_ref[...]
        idx = 0
        for (H, C, has_relu) in layer_meta:
            w_ref, adst_ref, asrc_ref, scale_ref, shift_ref = params[idx:idx + 5]
            idx += 5
            acc = _gat_attention(h_val, adj_bias, w_ref[...], adst_ref[...],
                                 asrc_ref[...], H, C)
            # (mean over heads + GATConv bias + BatchNorm1d(eval)) folded to scale/shift.
            h_val = acc * scale_ref[...] + shift_ref[...]
            if has_relu:
                h_val = jnp.maximum(h_val, 0.0)
            # dropout is identity in eval mode (training=False).
        out_ref[...] = h_val
    return kernel


def gat_model_forward(x, adj_bias, conv_params, bn_params):
    """Full GATModel forward; all layers fused into a single pallas_call.

    conv_params[li] = (w_all (Fin,H*C), a_dst_blk (H*C,H), a_src_blk (H,H*C), b (1,C))
    bn_params[li]   = (bn_scale (1,C), bn_shift (1,C))   for li < num_layers-1
    """
    N = x.shape[0]
    L = len(conv_params)
    inputs = [x, adj_bias]
    layer_meta = []
    for li, (w_all, a_dst_blk, a_src_blk, b) in enumerate(conv_params):
        H = a_dst_blk.shape[1]
        C = w_all.shape[1] // H
        has_bn = li < L - 1
        inv_h = jnp.float32(1.0 / H)
        if has_bn:
            bn_scale, bn_shift = bn_params[li]
            fused_scale = bn_scale * inv_h                   # acts on SUM over heads
            fused_shift = b * bn_scale + bn_shift
        else:
            fused_scale = jnp.full((1, C), inv_h, jnp.float32)
            fused_shift = b
        layer_meta.append((H, C, has_bn))
        inputs.extend([w_all.astype(jnp.bfloat16),           # pre-cast: half the weight DMA
                       a_dst_blk, a_src_blk, fused_scale, fused_shift])
    out_c = layer_meta[-1][1]
    kernel = _build_model_kernel(tuple(layer_meta))
    return pl.pallas_call(
        kernel,
        out_shape=jax.ShapeDtypeStruct((N, out_c), jnp.float32),
    )(*inputs)


# ----------------------------------------------------------------------------- #
# doc_projection: nn.Linear(in_channels, out_channels) as a tiny Pallas kernel
# ----------------------------------------------------------------------------- #
def _linear_kernel(x_ref, w_ref, b_ref, o_ref):
    o_ref[...] = (jnp.dot(x_ref[...], w_ref[...],
                          preferred_element_type=jnp.float32) + b_ref[...])


def linear_forward(x, w, b):
    return pl.pallas_call(
        _linear_kernel,
        out_shape=jax.ShapeDtypeStruct((x.shape[0], w.shape[1]), jnp.float32),
    )(x, w, b)


# ----------------------------------------------------------------------------- #
# Parameter / input construction (packed for the fused kernel)
# ----------------------------------------------------------------------------- #
def make_params(key, in_channels, hidden_channels, out_channels, num_layers, num_heads=4):
    layer_dims = [(in_channels, hidden_channels)]
    layer_heads = [8]
    for _ in range(num_layers - 2):
        layer_dims.append((hidden_channels, hidden_channels))
        layer_heads.append(num_heads)
    layer_dims.append((hidden_channels, out_channels))
    layer_heads.append(num_heads)

    conv_params, bn_params = [], []
    for li, ((fin, fout), h) in enumerate(zip(layer_dims, layer_heads)):
        key, k1, k2, k3, k4 = jax.random.split(key, 5)
        scale = 1.0 / jnp.sqrt(jnp.float32(fin))
        w = jax.random.normal(k1, (h, fin, fout), jnp.float32) * scale    # per-head weights
        a_src = jax.random.normal(k2, (h, fout), jnp.float32) * 0.1
        a_dst = jax.random.normal(k3, (h, fout), jnp.float32) * 0.1
        b = jax.random.normal(k4, (1, fout), jnp.float32) * 0.1

        # Pack heads for the fused kernel.
        w_all = jnp.transpose(w, (1, 0, 2)).reshape(fin, h * fout)        # (Fin, H*C)
        eye = jnp.eye(h, dtype=jnp.float32)
        a_dst_blk = (a_dst[:, :, None] * eye[:, None, :]).reshape(h * fout, h)   # (H*C, H)
        a_src_blk = (eye[:, :, None] * a_src[None, :, :]).reshape(h, h * fout)   # (H, H*C)
        conv_params.append((w_all, a_dst_blk, a_src_blk, b))

        if li < num_layers - 1:
            key, k5, k6, k7, k8 = jax.random.split(key, 5)
            gamma = 1.0 + 0.1 * jax.random.normal(k5, (1, fout), jnp.float32)
            beta = 0.1 * jax.random.normal(k6, (1, fout), jnp.float32)
            run_mean = 0.1 * jax.random.normal(k7, (1, fout), jnp.float32)
            run_var = 1.0 + 0.1 * jnp.abs(jax.random.normal(k8, (1, fout), jnp.float32))
            eps = 1e-5
            bn_scale = gamma / jnp.sqrt(run_var + eps)                    # BatchNorm1d (eval)
            bn_shift = beta - run_mean * bn_scale
            bn_params.append((bn_scale, bn_shift))
    return conv_params, bn_params


def build_adj_bias(edge_index, num_nodes):
    """Additive softmax mask: 0 where edge j->i exists (incl. self-loops), -1e30 elsewhere."""
    src, dst = edge_index[0], edge_index[1]
    adj = jnp.zeros((num_nodes, num_nodes), jnp.float32)
    adj = adj.at[dst, src].set(1.0)                                     # message j -> i at [i, j]
    adj = jnp.maximum(adj, jnp.eye(num_nodes, dtype=jnp.float32))       # add_self_loops=True
    # NOTE: duplicate edges collapse to a single softmax term (densified mask).
    return jnp.where(adj > 0, 0.0, -1e30).astype(jnp.float32)


if __name__ == "__main__":
    key = jax.random.PRNGKey(0)

    N = 16                 # number of graph nodes
    E = 40                 # number of edges
    B = 4                  # doc batch for the projection head
    in_channels = 8
    hidden_channels = 32
    out_channels = 8
    num_layers = 3
    dropout = 0.5          # eval mode -> identity

    key, kx, ke1, ke2, kp, kd, kw, kb = jax.random.split(key, 8)
    x = jax.random.normal(kx, (N, in_channels), jnp.float32)
    src = jax.random.randint(ke1, (E,), 0, N)
    dst = jax.random.randint(ke2, (E,), 0, N)
    edge_index = jnp.stack([src, dst], axis=0)        # (2, E)

    adj_bias = build_adj_bias(edge_index, N)
    conv_params, bn_params = make_params(kp, in_channels, hidden_channels,
                                         out_channels, num_layers)

    # GATModel branch (ques graph), single fused pallas_call.
    ques_node = gat_model_forward(x, adj_bias, conv_params, bn_params)

    # doc_projection = nn.Linear(in_channels, out_channels).
    doc_data = jax.random.normal(kd, (B, in_channels), jnp.float32)
    w_doc = (jax.random.normal(kw, (in_channels, out_channels), jnp.float32)
             / jnp.sqrt(jnp.float32(in_channels)))
    b_doc = jax.random.normal(kb, (1, out_channels), jnp.float32) * 0.1
    doc_emb = linear_forward(doc_data, w_doc, b_doc)

    ques_node, doc_emb = jax.block_until_ready((ques_node, doc_emb))
    assert ques_node.shape == (N, out_channels)
    assert doc_emb.shape == (B, out_channels)
    assert jnp.all(jnp.isfinite(ques_node))
    assert jnp.all(jnp.isfinite(doc_emb))
    print("KERNEL_OK")
</pallas_src>

<mosaic_0001>
module attributes {stable_mosaic.version = 11 : i64} {
  func.func @kernel(%arg0: memref<16x8xf32, #tpu.memory_space<vmem>>, %arg1: memref<16x16xf32, #tpu.memory_space<vmem>>, %arg2: memref<8x256xbf16, #tpu.memory_space<vmem>>, %arg3: memref<256x8xf32, #tpu.memory_space<vmem>>, %arg4: memref<8x256xf32, #tpu.memory_space<vmem>>, %arg5: memref<1x32xf32, #tpu.memory_space<vmem>>, %arg6: memref<1x32xf32, #tpu.memory_space<vmem>>, %arg7: memref<32x128xbf16, #tpu.memory_space<vmem>>, %arg8: memref<128x4xf32, #tpu.memory_space<vmem>>, %arg9: memref<4x128xf32, #tpu.memory_space<vmem>>, %arg10: memref<1x32xf32, #tpu.memory_space<vmem>>, %arg11: memref<1x32xf32, #tpu.memory_space<vmem>>, %arg12: memref<32x32xbf16, #tpu.memory_space<vmem>>, %arg13: memref<32x4xf32, #tpu.memory_space<vmem>>, %arg14: memref<4x32xf32, #tpu.memory_space<vmem>>, %arg15: memref<1x8xf32, #tpu.memory_space<vmem>>, %arg16: memref<1x8xf32, #tpu.memory_space<vmem>>, %arg17: memref<16x8xf32, #tpu.memory_space<vmem>>) attributes {dimension_semantics = [], scalar_prefetch = 0 : i64, scratch_operands = 0 : i64, tpu.core_type = #tpu.core_type<tc>} {
    %c0 = arith.constant 0 : index
    %c0_0 = arith.constant 0 : index
    %0 = vector.load %arg1[%c0, %c0_0] : memref<16x16xf32, #tpu.memory_space<vmem>>, vector<16x16xf32>
    %c0_1 = arith.constant 0 : index
    %c0_2 = arith.constant 0 : index
    %1 = vector.load %arg0[%c0_1, %c0_2] : memref<16x8xf32, #tpu.memory_space<vmem>>, vector<16x8xf32>
    %c0_3 = arith.constant 0 : index
    %c0_4 = arith.constant 0 : index
    %2 = vector.load %arg2[%c0_3, %c0_4] : memref<8x256xbf16, #tpu.memory_space<vmem>>, vector<8x256xbf16>
    %c0_5 = arith.constant 0 : index
    %c0_6 = arith.constant 0 : index
    %3 = vector.load %arg3[%c0_5, %c0_6] : memref<256x8xf32, #tpu.memory_space<vmem>>, vector<256x8xf32>
    %c0_7 = arith.constant 0 : index
    %c0_8 = arith.constant 0 : index
    %4 = vector.load %arg4[%c0_7, %c0_8] : memref<8x256xf32, #tpu.memory_space<vmem>>, vector<8x256xf32>
    %5 = arith.truncf %1 : vector<16x8xf32> to vector<16x8xbf16>
    %cst = arith.constant dense<0.000000e+00> : vector<16x256xf32>
    %6 = tpu.matmul %5, %2, %cst {dimension_numbers = #tpu.dot_dimension_numbers<[1], [0], [0], [1], [0, 0, 1, 1], [], []>} : vector<16x8xbf16>, vector<8x256xbf16>, vector<16x256xf32> -> vector<16x256xf32>
    %cst_9 = arith.constant dense<0.000000e+00> : vector<16x8xf32>
    %7 = tpu.matmul %6, %3, %cst_9 {dimension_numbers = #tpu.dot_dimension_numbers<[1], [0], [0], [1], [0, 0, 1, 1], [], []>} : vector<16x256xf32>, vector<256x8xf32>, vector<16x8xf32> -> vector<16x8xf32>
    %cst_10 = arith.constant dense<0.000000e+00> : vector<8x16xf32>
    %8 = tpu.matmul %4, %6, %cst_10 {dimension_numbers = #tpu.dot_dimension_numbers<[1], [1], [0], [0], [0, 0, 1, 0], [], []>} : vector<8x256xf32>, vector<16x256xf32>, vector<8x16xf32> -> vector<8x16xf32>
    %9 = arith.truncf %6 : vector<16x256xf32> to vector<16x256xbf16>
    %10 = vector.extract_strided_slice %7 {offsets = [0, 0], sizes = [16, 1], strides = [1, 1]} : vector<16x8xf32> to vector<16x1xf32>
    %11 = vector.extract_strided_slice %8 {offsets = [0, 0], sizes = [1, 16], strides = [1, 1]} : vector<8x16xf32> to vector<1x16xf32>
    %12 = vector.broadcast %10 : vector<16x1xf32> to vector<16x16xf32>
    %13 = vector.broadcast %11 : vector<1x16xf32> to vector<16x16xf32>
    %14 = arith.addf %12, %13 : vector<16x16xf32>
    %cst_11 = arith.constant 0.000000e+00 : f32
    %15 = vector.broadcast %cst_11 : f32 to vector<16x16xf32>
    %16 = arith.cmpf ogt, %14, %15 : vector<16x16xf32>
    %cst_12 = arith.constant 2.000000e-01 : f32
    %17 = vector.broadcast %cst_12 : f32 to vector<16x16xf32>
    %18 = arith.mulf %17, %14 : vector<16x16xf32>
    %19 = arith.select %16, %14, %18 : vector<16x16xi1>, vector<16x16xf32>
    %20 = arith.addf %19, %0 : vector<16x16xf32>
    %cst_13 = arith.constant dense<0xFF800000> : vector<16xf32>
    %21 = vector.multi_reduction <maximumf>, %20, %cst_13 [1] : vector<16x16xf32> to vector<16xf32>
    %22 = vector.shape_cast %21 : vector<16xf32> to vector<16x1xf32>
    %23 = vector.broadcast %22 : vector<16x1xf32> to vector<16x16xf32>
    %24 = arith.subf %20, %23 : vector<16x16xf32>
    %25 = math.exp %24 : vector<16x16xf32>
    %cst_14 = arith.constant dense<0.000000e+00> : vector<16xf32>
    %26 = vector.multi_reduction <add>, %25, %cst_14 [1] : vector<16x16xf32> to vector<16xf32>
    %27 = vector.shape_cast %26 : vector<16xf32> to vector<16x1xf32>
    %28 = tpu.reciprocal %27 {approx = true} : vector<16x1xf32> -> vector<16x1xf32>
    %29 = vector.broadcast %28 : vector<16x1xf32> to vector<16x16xf32>
    %30 = arith.mulf %25, %29 : vector<16x16xf32>
    %31 = vector.extract_strided_slice %9 {offsets = [0, 0], sizes = [16, 32], strides = [1, 1]} : vector<16x256xbf16> to vector<16x32xbf16>
    %32 = arith.truncf %30 : vector<16x16xf32> to vector<16x16xbf16>
    %cst_15 = arith.constant dense<0.000000e+00> : vector<16x32xf32>
    %33 = tpu.matmul %32, %31, %cst_15 {dimension_numbers = #tpu.dot_dimension_numbers<[1], [0], [0], [1], [0, 0, 1, 1], [], []>} : vector<16x16xbf16>, vector<16x32xbf16>, vector<16x32xf32> -> vector<16x32xf32>
    %34 = vector.extract_strided_slice %7 {offsets = [0, 1], sizes = [16, 1], strides = [1, 1]} : vector<16x8xf32> to vector<16x1xf32>
    %35 = vector.extract_strided_slice %8 {offsets = [1, 0], sizes = [1, 16], strides = [1, 1]} : vector<8x16xf32> to vector<1x16xf32>
    %36 = vector.broadcast %34 : vector<16x1xf32> to vector<16x16xf32>
    %37 = vector.broadcast %35 : vector<1x16xf32> to vector<16x16xf32>
    %38 = arith.addf %36, %37 : vector<16x16xf32>
    %cst_16 = arith.constant 0.000000e+00 : f32
    %39 = vector.broadcast %cst_16 : f32 to vector<16x16xf32>
    %40 = arith.cmpf ogt, %38, %39 : vector<16x16xf32>
    %cst_17 = arith.constant 2.000000e-01 : f32
    %41 = vector.broadcast %cst_17 : f32 to vector<16x16xf32>
    %42 = arith.mulf %41, %38 : vector<16x16xf32>
    %43 = arith.select %40, %38, %42 : vector<16x16xi1>, vector<16x16xf32>
    %44 = arith.addf %43, %0 : vector<16x16xf32>
    %cst_18 = arith.constant dense<0xFF800000> : vector<16xf32>
    %45 = vector.multi_reduction <maximumf>, %44, %cst_18 [1] : vector<16x16xf32> to vector<16xf32>
    %46 = vector.shape_cast %45 : vector<16xf32> to vector<16x1xf32>
    %47 = vector.broadcast %46 : vector<16x1xf32> to vector<16x16xf32>
    %48 = arith.subf %44, %47 : vector<16x16xf32>
    %49 = math.exp %48 : vector<16x16xf32>
    %cst_19 = arith.constant dense<0.000000e+00> : vector<16xf32>
    %50 = vector.multi_reduction <add>, %49, %cst_19 [1] : vector<16x16xf32> to vector<16xf32>
    %51 = vector.shape_cast %50 : vector<16xf32> to vector<16x1xf32>
    %52 = tpu.reciprocal %51 {approx = true} : vector<16x1xf32> -> vector<16x1xf32>
    %53 = vector.broadcast %52 : vector<16x1xf32> to vector<16x16xf32>
    %54 = arith.mulf %49, %53 : vector<16x16xf32>
    %55 = vector.extract_strided_slice %9 {offsets = [0, 32], sizes = [16, 32], strides = [1, 1]} : vector<16x256xbf16> to vector<16x32xbf16>
    %56 = arith.truncf %54 : vector<16x16xf32> to vector<16x16xbf16>
    %cst_20 = arith.constant dense<0.000000e+00> : vector<16x32xf32>
    %57 = tpu.matmul %56, %55, %cst_20 {dimension_numbers = #tpu.dot_dimension_numbers<[1], [0], [0], [1], [0, 0, 1, 1], [], []>} : vector<16x16xbf16>, vector<16x32xbf16>, vector<16x32xf32> -> vector<16x32xf32>
    %58 = arith.addf %33, %57 : vector<16x32xf32>
    %59 = vector.extract_strided_slice %7 {offsets = [0, 2], sizes = [16, 1], strides = [1, 1]} : vector<16x8xf32> to vector<16x1xf32>
    %60 = vector.extract_strided_slice %8 {offsets = [2, 0], sizes = [1, 16], strides = [1, 1]} : vector<8x16xf32> to vector<1x16xf32>
    %61 = vector.broadcast %59 : vector<16x1xf32> to vector<16x16xf32>
    %62 = vector.broadcast %60 : vector<1x16xf32> to vector<16x16xf32>
    %63 = arith.addf %61, %62 : vector<16x16xf32>
    %cst_21 = arith.constant 0.000000e+00 : f32
    %64 = vector.broadcast %cst_21 : f32 to vector<16x16xf32>
    %65 = arith.cmpf ogt, %63, %64 : vector<16x16xf32>
    %cst_22 = arith.constant 2.000000e-01 : f32
    %66 = vector.broadcast %cst_22 : f32 to vector<16x16xf32>
    %67 = arith.mulf %66, %63 : vector<16x16xf32>
    %68 = arith.select %65, %63, %67 : vector<16x16xi1>, vector<16x16xf32>
    %69 = arith.addf %68, %0 : vector<16x16xf32>
    %cst_23 = arith.constant dense<0xFF800000> : vector<16xf32>
    %70 = vector.multi_reduction <maximumf>, %69, %cst_23 [1] : vector<16x16xf32> to vector<16xf32>
    %71 = vector.shape_cast %70 : vector<16xf32> to vector<16x1xf32>
    %72 = vector.broadcast %71 : vector<16x1xf32> to vector<16x16xf32>
    %73 = arith.subf %69, %72 : vector<16x16xf32>
    %74 = math.exp %73 : vector<16x16xf32>
    %cst_24 = arith.constant dense<0.000000e+00> : vector<16xf32>
    %75 = vector.multi_reduction <add>, %74, %cst_24 [1] : vector<16x16xf32> to vector<16xf32>
    %76 = vector.shape_cast %75 : vector<16xf32> to vector<16x1xf32>
    %77 = tpu.reciprocal %76 {approx = true} : vector<16x1xf32> -> vector<16x1xf32>
    %78 = vector.broadcast %77 : vector<16x1xf32> to vector<16x16xf32>
    %79 = arith.mulf %74, %78 : vector<16x16xf32>
    %80 = vector.extract_strided_slice %9 {offsets = [0, 64], sizes = [16, 32], strides = [1, 1]} : vector<16x256xbf16> to vector<16x32xbf16>
    %81 = arith.truncf %79 : vector<16x16xf32> to vector<16x16xbf16>
    %cst_25 = arith.constant dense<0.000000e+00> : vector<16x32xf32>
    %82 = tpu.matmul %81, %80, %cst_25 {dimension_numbers = #tpu.dot_dimension_numbers<[1], [0], [0], [1], [0, 0, 1, 1], [], []>} : vector<16x16xbf16>, vector<16x32xbf16>, vector<16x32xf32> -> vector<16x32xf32>
    %83 = arith.addf %58, %82 : vector<16x32xf32>
    %84 = vector.extract_strided_slice %7 {offsets = [0, 3], sizes = [16, 1], strides = [1, 1]} : vector<16x8xf32> to vector<16x1xf32>
    %85 = vector.extract_strided_slice %8 {offsets = [3, 0], sizes = [1, 16], strides = [1, 1]} : vector<8x16xf32> to vector<1x16xf32>
    %86 = vector.broadcast %84 : vector<16x1xf32> to vector<16x16xf32>
    %87 = vector.broadcast %85 : vector<1x16xf32> to vector<16x16xf32>
    %88 = arith.addf %86, %87 : vector<16x16xf32>
    %cst_26 = arith.constant 0.000000e+00 : f32
    %89 = vector.broadcast %cst_26 : f32 to vector<16x16xf32>
    %90 = arith.cmpf ogt, %88, %89 : vector<16x16xf32>
    %cst_27 = arith.constant 2.000000e-01 : f32
    %91 = vector.broadcast %cst_27 : f32 to vector<16x16xf32>
    %92 = arith.mulf %91, %88 : vector<16x16xf32>
    %93 = arith.select %90, %88, %92 : vector<16x16xi1>, vector<16x16xf32>
    %94 = arith.addf %93, %0 : vector<16x16xf32>
    %cst_28 = arith.constant dense<0xFF800000> : vector<16xf32>
    %95 = vector.multi_reduction <maximumf>, %94, %cst_28 [1] : vector<16x16xf32> to vector<16xf32>
    %96 = vector.shape_cast %95 : vector<16xf32> to vector<16x1xf32>
    %97 = vector.broadcast %96 : vector<16x1xf32> to vector<16x16xf32>
    %98 = arith.subf %94, %97 : vector<16x16xf32>
    %99 = math.exp %98 : vector<16x16xf32>
    %cst_29 = arith.constant dense<0.000000e+00> : vector<16xf32>
    %100 = vector.multi_reduction <add>, %99, %cst_29 [1] : vector<16x16xf32> to vector<16xf32>
    %101 = vector.shape_cast %100 : vector<16xf32> to vector<16x1xf32>
    %102 = tpu.reciprocal %101 {approx = true} : vector<16x1xf32> -> vector<16x1xf32>
    %103 = vector.broadcast %102 : vector<16x1xf32> to vector<16x16xf32>
    %104 = arith.mulf %99, %103 : vector<16x16xf32>
    %105 = vector.extract_strided_slice %9 {offsets = [0, 96], sizes = [16, 32], strides = [1, 1]} : vector<16x256xbf16> to vector<16x32xbf16>
    %106 = arith.truncf %104 : vector<16x16xf32> to vector<16x16xbf16>
    %cst_30 = arith.constant dense<0.000000e+00> : vector<16x32xf32>
    %107 = tpu.matmul %106, %105, %cst_30 {dimension_numbers = #tpu.dot_dimension_numbers<[1], [0], [0], [1], [0, 0, 1, 1], [], []>} : vector<16x16xbf16>, vector<16x32xbf16>, vector<16x32xf32> -> vector<16x32xf32>
    %108 = arith.addf %83, %107 : vector<16x32xf32>
    %109 = vector.extract_strided_slice %7 {offsets = [0, 4], sizes = [16, 1], strides = [1, 1]} : vector<16x8xf32> to vector<16x1xf32>
    %110 = vector.extract_strided_slice %8 {offsets = [4, 0], sizes = [1, 16], strides = [1, 1]} : vector<8x16xf32> to vector<1x16xf32>
    %111 = vector.broadcast %109 : vector<16x1xf32> to vector<16x16xf32>
    %112 = vector.broadcast %110 : vector<1x16xf32> to vector<16x16xf32>
    %113 = arith.addf %111, %112 : vector<16x16xf32>
    %cst_31 = arith.constant 0.000000e+00 : f32
    %114 = vector.broadcast %cst_31 : f32 to vector<16x16xf32>
    %115 = arith.cmpf ogt, %113, %114 : vector<16x16xf32>
    %cst_32 = arith.constant 2.000000e-01 : f32
    %116 = vector.broadcast %cst_32 : f32 to vector<16x16xf32>
    %117 = arith.mulf %116, %113 : vector<16x16xf32>
    %118 = arith.select %115, %113, %117 : vector<16x16xi1>, vector<16x16xf32>
    %119 = arith.addf %118, %0 : vector<16x16xf32>
    %cst_33 = arith.constant dense<0xFF800000> : vector<16xf32>
    %120 = vector.multi_reduction <maximumf>, %119, %cst_33 [1] : vector<16x16xf32> to vector<16xf32>
    %121 = vector.shape_cast %120 : vector<16xf32> to vector<16x1xf32>
    %122 = vector.broadcast %121 : vector<16x1xf32> to vector<16x16xf32>
    %123 = arith.subf %119, %122 : vector<16x16xf32>
    %124 = math.exp %123 : vector<16x16xf32>
    %cst_34 = arith.constant dense<0.000000e+00> : vector<16xf32>
    %125 = vector.multi_reduction <add>, %124, %cst_34 [1] : vector<16x16xf32> to vector<16xf32>
    %126 = vector.shape_cast %125 : vector<16xf32> to vector<16x1xf32>
    %127 = tpu.reciprocal %126 {approx = true} : vector<16x1xf32> -> vector<16x1xf32>
    %128 = vector.broadcast %127 : vector<16x1xf32> to vector<16x16xf32>
    %129 = arith.mulf %124, %128 : vector<16x16xf32>
    %130 = vector.extract_strided_slice %9 {offsets = [0, 128], sizes = [16, 32], strides = [1, 1]} : vector<16x256xbf16> to vector<16x32xbf16>
    %131 = arith.truncf %129 : vector<16x16xf32> to vector<16x16xbf16>
    %cst_35 = arith.constant dense<0.000000e+00> : vector<16x32xf32>
    %132 = tpu.matmul %131, %130, %cst_35 {dimension_numbers = #tpu.dot_dimension_numbers<[1], [0], [0], [1], [0, 0, 1, 1], [], []>} : vector<16x16xbf16>, vector<16x32xbf16>, vector<16x32xf32> -> vector<16x32xf32>
    %133 = arith.addf %108, %132 : vector<16x32xf32>
    %134 = vector.extract_strided_slice %7 {offsets = [0, 5], sizes = [16, 1], strides = [1, 1]} : vector<16x8xf32> to vector<16x1xf32>
    %135 = vector.extract_strided_slice %8 {offsets = [5, 0], sizes = [1, 16], strides = [1, 1]} : vector<8x16xf32> to vector<1x16xf32>
    %136 = vector.broadcast %134 : vector<16x1xf32> to vector<16x16xf32>
    %137 = vector.broadcast %135 : vector<1x16xf32> to vector<16x16xf32>
    %138 = arith.addf %136, %137 : vector<16x16xf32>
    %cst_36 = arith.constant 0.000000e+00 : f32
    %139 = vector.broadcast %cst_36 : f32 to vector<16x16xf32>
    %140 = arith.cmpf ogt, %138, %139 : vector<16x16xf32>
    %cst_37 = arith.constant 2.000000e-01 : f32
    %141 = vector.broadcast %cst_37 : f32 to vector<16x16xf32>
    %142 = arith.mulf %141, %138 : vector<16x16xf32>
    %143 = arith.select %140, %138, %142 : vector<16x16xi1>, vector<16x16xf32>
    %144 = arith.addf %143, %0 : vector<16x16xf32>
    %cst_38 = arith.constant dense<0xFF800000> : vector<16xf32>
    %145 = vector.multi_reduction <maximumf>, %144, %cst_38 [1] : vector<16x16xf32> to vector<16xf32>
    %146 = vector.shape_cast %145 : vector<16xf32> to vector<16x1xf32>
    %147 = vector.broadcast %146 : vector<16x1xf32> to vector<16x16xf32>
    %148 = arith.subf %144, %147 : vector<16x16xf32>
    %149 = math.exp %148 : vector<16x16xf32>
    %cst_39 = arith.constant dense<0.000000e+00> : vector<16xf32>
    %150 = vector.multi_reduction <add>, %149, %cst_39 [1] : vector<16x16xf32> to vector<16xf32>
    %151 = vector.shape_cast %150 : vector<16xf32> to vector<16x1xf32>
    %152 = tpu.reciprocal %151 {approx = true} : vector<16x1xf32> -> vector<16x1xf32>
    %153 = vector.broadcast %152 : vector<16x1xf32> to vector<16x16xf32>
    %154 = arith.mulf %149, %153 : vector<16x16xf32>
    %155 = vector.extract_strided_slice %9 {offsets = [0, 160], sizes = [16, 32], strides = [1, 1]} : vector<16x256xbf16> to vector<16x32xbf16>
    %156 = arith.truncf %154 : vector<16x16xf32> to vector<16x16xbf16>
    %cst_40 = arith.constant dense<0.000000e+00> : vector<16x32xf32>
    %157 = tpu.matmul %156, %155, %cst_40 {dimension_numbers = #tpu.dot_dimension_numbers<[1], [0], [0], [1], [0, 0, 1, 1], [], []>} : vector<16x16xbf16>, vector<16x32xbf16>, vector<16x32xf32> -> vector<16x32xf32>
    %158 = arith.addf %133, %157 : vector<16x32xf32>
    %159 = vector.extract_strided_slice %7 {offsets = [0, 6], sizes = [16, 1], strides = [1, 1]} : vector<16x8xf32> to vector<16x1xf32>
    %160 = vector.extract_strided_slice %8 {offsets = [6, 0], sizes = [1, 16], strides = [1, 1]} : vector<8x16xf32> to vector<1x16xf32>
    %161 = vector.broadcast %159 : vector<16x1xf32> to vector<16x16xf32>
    %162 = vector.broadcast %160 : vector<1x16xf32> to vector<16x16xf32>
    %163 = arith.addf %161, %162 : vector<16x16xf32>
    %cst_41 = arith.constant 0.000000e+00 : f32
    %164 = vector.broadcast %cst_41 : f32 to vector<16x16xf32>
    %165 = arith.cmpf ogt, %163, %164 : vector<16x16xf32>
    %cst_42 = arith.constant 2.000000e-01 : f32
    %166 = vector.broadcast %cst_42 : f32 to vector<16x16xf32>
    %167 = arith.mulf %166, %163 : vector<16x16xf32>
    %168 = arith.select %165, %163, %167 : vector<16x16xi1>, vector<16x16xf32>
    %169 = arith.addf %168, %0 : vector<16x16xf32>
    %cst_43 = arith.constant dense<0xFF800000> : vector<16xf32>
    %170 = vector.multi_reduction <maximumf>, %169, %cst_43 [1] : vector<16x16xf32> to vector<16xf32>
    %171 = vector.shape_cast %170 : vector<16xf32> to vector<16x1xf32>
    %172 = vector.broadcast %171 : vector<16x1xf32> to vector<16x16xf32>
    %173 = arith.subf %169, %172 : vector<16x16xf32>
    %174 = math.exp %173 : vector<16x16xf32>
    %cst_44 = arith.constant dense<0.000000e+00> : vector<16xf32>
    %175 = vector.multi_reduction <add>, %174, %cst_44 [1] : vector<16x16xf32> to vector<16xf32>
    %176 = vector.shape_cast %175 : vector<16xf32> to vector<16x1xf32>
    %177 = tpu.reciprocal %176 {approx = true} : vector<16x1xf32> -> vector<16x1xf32>
    %178 = vector.broadcast %177 : vector<16x1xf32> to vector<16x16xf32>
    %179 = arith.mulf %174, %178 : vector<16x16xf32>
    %180 = vector.extract_strided_slice %9 {offsets = [0, 192], sizes = [16, 32], strides = [1, 1]} : vector<16x256xbf16> to vector<16x32xbf16>
    %181 = arith.truncf %179 : vector<16x16xf32> to vector<16x16xbf16>
    %cst_45 = arith.constant dense<0.000000e+00> : vector<16x32xf32>
    %182 = tpu.matmul %181, %180, %cst_45 {dimension_numbers = #tpu.dot_dimension_numbers<[1], [0], [0], [1], [0, 0, 1, 1], [], []>} : vector<16x16xbf16>, vector<16x32xbf16>, vector<16x32xf32> -> vector<16x32xf32>
    %183 = arith.addf %158, %182 : vector<16x32xf32>
    %184 = vector.extract_strided_slice %7 {offsets = [0, 7], sizes = [16, 1], strides = [1, 1]} : vector<16x8xf32> to vector<16x1xf32>
    %185 = vector.extract_strided_slice %8 {offsets = [7, 0], sizes = [1, 16], strides = [1, 1]} : vector<8x16xf32> to vector<1x16xf32>
    %186 = vector.broadcast %184 : vector<16x1xf32> to vector<16x16xf32>
    %187 = vector.broadcast %185 : vector<1x16xf32> to vector<16x16xf32>
    %188 = arith.addf %186, %187 : vector<16x16xf32>
    %cst_46 = arith.constant 0.000000e+00 : f32
    %189 = vector.broadcast %cst_46 : f32 to vector<16x16xf32>
    %190 = arith.cmpf ogt, %188, %189 : vector<16x16xf32>
    %cst_47 = arith.constant 2.000000e-01 : f32
    %191 = vector.broadcast %cst_47 : f32 to vector<16x16xf32>
    %192 = arith.mulf %191, %188 : vector<16x16xf32>
    %193 = arith.select %190, %188, %192 : vector<16x16xi1>, vector<16x16xf32>
    %194 = arith.addf %193, %0 : vector<16x16xf32>
    %cst_48 = arith.constant dense<0xFF800000> : vector<16xf32>
    %195 = vector.multi_reduction <maximumf>, %194, %cst_48 [1] : vector<16x16xf32> to vector<16xf32>
    %196 = vector.shape_cast %195 : vector<16xf32> to vector<16x1xf32>
    %197 = vector.broadcast %196 : vector<16x1xf32> to vector<16x16xf32>
    %198 = arith.subf %194, %197 : vector<16x16xf32>
    %199 = math.exp %198 : vector<16x16xf32>
    %cst_49 = arith.constant dense<0.000000e+00> : vector<16xf32>
    %200 = vector.multi_reduction <add>, %199, %cst_49 [1] : vector<16x16xf32> to vector<16xf32>
    %201 = vector.shape_cast %200 : vector<16xf32> to vector<16x1xf32>
    %202 = tpu.reciprocal %201 {approx = true} : vector<16x1xf32> -> vector<16x1xf32>
    %203 = vector.broadcast %202 : vector<16x1xf32> to vector<16x16xf32>
    %204 = arith.mulf %199, %203 : vector<16x16xf32>
    %205 = vector.extract_strided_slice %9 {offsets = [0, 224], sizes = [16, 32], strides = [1, 1]} : vector<16x256xbf16> to vector<16x32xbf16>
    %206 = arith.truncf %204 : vector<16x16xf32> to vector<16x16xbf16>
    %cst_50 = arith.constant dense<0.000000e+00> : vector<16x32xf32>
    %207 = tpu.matmul %206, %205, %cst_50 {dimension_numbers = #tpu.dot_dimension_numbers<[1], [0], [0], [1], [0, 0, 1, 1], [], []>} : vector<16x16xbf16>, vector<16x32xbf16>, vector<16x32xf32> -> vector<16x32xf32>
    %208 = arith.addf %183, %207 : vector<16x32xf32>
    %c0_51 = arith.constant 0 : index
    %c0_52 = arith.constant 0 : index
    %209 = vector.load %arg5[%c0_51, %c0_52] : memref<1x32xf32, #tpu.memory_space<vmem>>, vector<1x32xf32>
    %210 = vector.broadcast %209 : vector<1x32xf32> to vector<16x32xf32>
    %211 = arith.mulf %208, %210 : vector<16x32xf32>
    %c0_53 = arith.constant 0 : index
    %c0_54 = arith.constant 0 : index
    %212 = vector.load %arg6[%c0_53, %c0_54] : memref<1x32xf32, #tpu.memory_space<vmem>>, vector<1x32xf32>
    %213 = vector.broadcast %212 : vector<1x32xf32> to vector<16x32xf32>
    %214 = arith.addf %211, %213 : vector<16x32xf32>
    %cst_55 = arith.constant 0.000000e+00 : f32
    %215 = vector.broadcast %cst_55 : f32 to vector<16x32xf32>
    %216 = arith.maximumf %214, %215 : vector<16x32xf32>
    %c0_56 = arith.constant 0 : index
    %c0_57 = arith.constant 0 : index
    %217 = vector.load %arg7[%c0_56, %c0_57] : memref<32x128xbf16, #tpu.memory_space<vmem>>, vector<32x128xbf16>
    %c0_58 = arith.constant 0 : index
    %c0_59 = arith.constant 0 : index
    %218 = vector.load %arg8[%c0_58, %c0_59] : memref<128x4xf32, #tpu.memory_space<vmem>>, vector<128x4xf32>
    %c0_60 = arith.constant 0 : index
    %c0_61 = arith.constant 0 : index
    %219 = vector.load %arg9[%c0_60, %c0_61] : memref<4x128xf32, #tpu.memory_space<vmem>>, vector<4x128xf32>
    %220 = arith.truncf %216 : vector<16x32xf32> to vector<16x32xbf16>
    %cst_62 = arith.constant dense<0.000000e+00> : vector<16x128xf32>
    %221 = tpu.matmul %220, %217, %cst_62 {dimension_numbers = #tpu.dot_dimension_numbers<[1], [0], [0], [1], [0, 0, 1, 1], [], []>} : vector<16x32xbf16>, vector<32x128xbf16>, vector<16x128xf32> -> vector<16x128xf32>
    %cst_63 = arith.constant dense<0.000000e+00> : vector<16x4xf32>
    %222 = tpu.matmul %221, %218, %cst_63 {dimension_numbers = #tpu.dot_dimension_numbers<[1], [0], [0], [1], [0, 0, 1, 1], [], []>} : vector<16x128xf32>, vector<128x4xf32>, vector<16x4xf32> -> vector<16x4xf32>
    %cst_64 = arith.constant dense<0.000000e+00> : vector<4x16xf32>
    %223 = tpu.matmul %219, %221, %cst_64 {dimension_numbers = #tpu.dot_dimension_numbers<[1], [1], [0], [0], [0, 0, 1, 0], [], []>} : vector<4x128xf32>, vector<16x128xf32>, vector<4x16xf32> -> vector<4x16xf32>
    %224 = arith.truncf %221 : vector<16x128xf32> to vector<16x128xbf16>
    %225 = vector.extract_strided_slice %222 {offsets = [0, 0], sizes = [16, 1], strides = [1, 1]} : vector<16x4xf32> to vector<16x1xf32>
    %226 = vector.extract_strided_slice %223 {offsets = [0, 0], sizes = [1, 16], strides = [1, 1]} : vector<4x16xf32> to vector<1x16xf32>
    %227 = vector.broadcast %225 : vector<16x1xf32> to vector<16x16xf32>
    %228 = vector.broadcast %226 : vector<1x16xf32> to vector<16x16xf32>
    %229 = arith.addf %227, %228 : vector<16x16xf32>
    %cst_65 = arith.constant 0.000000e+00 : f32
    %230 = vector.broadcast %cst_65 : f32 to vector<16x16xf32>
    %231 = arith.cmpf ogt, %229, %230 : vector<16x16xf32>
    %cst_66 = arith.constant 2.000000e-01 : f32
    %232 = vector.broadcast %cst_66 : f32 to vector<16x16xf32>
    %233 = arith.mulf %232, %229 : vector<16x16xf32>
    %234 = arith.select %231, %229, %233 : vector<16x16xi1>, vector<16x16xf32>
    %235 = arith.addf %234, %0 : vector<16x16xf32>
    %cst_67 = arith.constant dense<0xFF800000> : vector<16xf32>
    %236 = vector.multi_reduction <maximumf>, %235, %cst_67 [1] : vector<16x16xf32> to vector<16xf32>
    %237 = vector.shape_cast %236 : vector<16xf32> to vector<16x1xf32>
    %238 = vector.broadcast %237 : vector<16x1xf32> to vector<16x16xf32>
    %239 = arith.subf %235, %238 : vector<16x16xf32>
    %240 = math.exp %239 : vector<16x16xf32>
    %cst_68 = arith.constant dense<0.000000e+00> : vector<16xf32>
    %241 = vector.multi_reduction <add>, %240, %cst_68 [1] : vector<16x16xf32> to vector<16xf32>
    %242 = vector.shape_cast %241 : vector<16xf32> to vector<16x1xf32>
    %243 = tpu.reciprocal %242 {approx = true} : vector<16x1xf32> -> vector<16x1xf32>
    %244 = vector.broadcast %243 : vector<16x1xf32> to vector<16x16xf32>
    %245 = arith.mulf %240, %244 : vector<16x16xf32>
    %246 = vector.extract_strided_slice %224 {offsets = [0, 0], sizes = [16, 32], strides = [1, 1]} : vector<16x128xbf16> to vector<16x32xbf16>
    %247 = arith.truncf %245 : vector<16x16xf32> to vector<16x16xbf16>
    %cst_69 = arith.constant dense<0.000000e+00> : vector<16x32xf32>
    %248 = tpu.matmul %247, %246, %cst_69 {dimension_numbers = #tpu.dot_dimension_numbers<[1], [0], [0], [1], [0, 0, 1, 1], [], []>} : vector<16x16xbf16>, vector<16x32xbf16>, vector<16x32xf32> -> vector<16x32xf32>
    %249 = vector.extract_strided_slice %222 {offsets = [0, 1], sizes = [16, 1], strides = [1, 1]} : vector<16x4xf32> to vector<16x1xf32>
    %250 = vector.extract_strided_slice %223 {offsets = [1, 0], sizes = [1, 16], strides = [1, 1]} : vector<4x16xf32> to vector<1x16xf32>
    %251 = vector.broadcast %249 : vector<16x1xf32> to vector<16x16xf32>
    %252 = vector.broadcast %250 : vector<1x16xf32> to vector<16x16xf32>
    %253 = arith.addf %251, %252 : vector<16x16xf32>
    %cst_70 = arith.constant 0.000000e+00 : f32
    %254 = vector.broadcast %cst_70 : f32 to vector<16x16xf32>
    %255 = arith.cmpf ogt, %253, %254 : vector<16x16xf32>
    %cst_71 = arith.constant 2.000000e-01 : f32
    %256 = vector.broadcast %cst_71 : f32 to vector<16x16xf32>
    %257 = arith.mulf %256, %253 : vector<16x16xf32>
    %258 = arith.select %255, %253, %257 : vector<16x16xi1>, vector<16x16xf32>
    %259 = arith.addf %258, %0 : vector<16x16xf32>
    %cst_72 = arith.constant dense<0xFF800000> : vector<16xf32>
    %260 = vector.multi_reduction <maximumf>, %259, %cst_72 [1] : vector<16x16xf32> to vector<16xf32>
    %261 = vector.shape_cast %260 : vector<16xf32> to vector<16x1xf32>
    %262 = vector.broadcast %261 : vector<16x1xf32> to vector<16x16xf32>
    %263 = arith.subf %259, %262 : vector<16x16xf32>
    %264 = math.exp %263 : vector<16x16xf32>
    %cst_73 = arith.constant dense<0.000000e+00> : vector<16xf32>
    %265 = vector.multi_reduction <add>, %264, %cst_73 [1] : vector<16x16xf32> to vector<16xf32>
    %266 = vector.shape_cast %265 : vector<16xf32> to vector<16x1xf32>
    %267 = tpu.reciprocal %266 {approx = true} : vector<16x1xf32> -> vector<16x1xf32>
    %268 = vector.broadcast %267 : vector<16x1xf32> to vector<16x16xf32>
    %269 = arith.mulf %264, %268 : vector<16x16xf32>
    %270 = vector.extract_strided_slice %224 {offsets = [0, 32], sizes = [16, 32], strides = [1, 1]} : vector<16x128xbf16> to vector<16x32xbf16>
    %271 = arith.truncf %269 : vector<16x16xf32> to vector<16x16xbf16>
    %cst_74 = arith.constant dense<0.000000e+00> : vector<16x32xf32>
    %272 = tpu.matmul %271, %270, %cst_74 {dimension_numbers = #tpu.dot_dimension_numbers<[1], [0], [0], [1], [0, 0, 1, 1], [], []>} : vector<16x16xbf16>, vector<16x32xbf16>, vector<16x32xf32> -> vector<16x32xf32>
    %273 = arith.addf %248, %272 : vector<16x32xf32>
    %274 = vector.extract_strided_slice %222 {offsets = [0, 2], sizes = [16, 1], strides = [1, 1]} : vector<16x4xf32> to vector<16x1xf32>
    %275 = vector.extract_strided_slice %223 {offsets = [2, 0], sizes = [1, 16], strides = [1, 1]} : vector<4x16xf32> to vector<1x16xf32>
    %276 = vector.broadcast %274 : vector<16x1xf32> to vector<16x16xf32>
    %277 = vector.broadcast %275 : vector<1x16xf32> to vector<16x16xf32>
    %278 = arith.addf %276, %277 : vector<16x16xf32>
    %cst_75 = arith.constant 0.000000e+00 : f32
    %279 = vector.broadcast %cst_75 : f32 to vector<16x16xf32>
    %280 = arith.cmpf ogt, %278, %279 : vector<16x16xf32>
    %cst_76 = arith.constant 2.000000e-01 : f32
    %281 = vector.broadcast %cst_76 : f32 to vector<16x16xf32>
    %282 = arith.mulf %281, %278 : vector<16x16xf32>
    %283 = arith.select %280, %278, %282 : vector<16x16xi1>, vector<16x16xf32>
    %284 = arith.addf %283, %0 : vector<16x16xf32>
    %cst_77 = arith.constant dense<0xFF800000> : vector<16xf32>
    %285 = vector.multi_reduction <maximumf>, %284, %cst_77 [1] : vector<16x16xf32> to vector<16xf32>
    %286 = vector.shape_cast %285 : vector<16xf32> to vector<16x1xf32>
    %287 = vector.broadcast %286 : vector<16x1xf32> to vector<16x16xf32>
    %288 = arith.subf %284, %287 : vector<16x16xf32>
    %289 = math.exp %288 : vector<16x16xf32>
    %cst_78 = arith.constant dense<0.000000e+00> : vector<16xf32>
    %290 = vector.multi_reduction <add>, %289, %cst_78 [1] : vector<16x16xf32> to vector<16xf32>
    %291 = vector.shape_cast %290 : vector<16xf32> to vector<16x1xf32>
    %292 = tpu.reciprocal %291 {approx = true} : vector<16x1xf32> -> vector<16x1xf32>
    %293 = vector.broadcast %292 : vector<16x1xf32> to vector<16x16xf32>
    %294 = arith.mulf %289, %293 : vector<16x16xf32>
    %295 = vector.extract_strided_slice %224 {offsets = [0, 64], sizes = [16, 32], strides = [1, 1]} : vector<16x128xbf16> to vector<16x32xbf16>
    %296 = arith.truncf %294 : vector<16x16xf32> to vector<16x16xbf16>
    %cst_79 = arith.constant dense<0.000000e+00> : vector<16x32xf32>
    %297 = tpu.matmul %296, %295, %cst_79 {dimension_numbers = #tpu.dot_dimension_numbers<[1], [0], [0], [1], [0, 0, 1, 1], [], []>} : vector<16x16xbf16>, vector<16x32xbf16>, vector<16x32xf32> -> vector<16x32xf32>
    %298 = arith.addf %273, %297 : vector<16x32xf32>
    %299 = vector.extract_strided_slice %222 {offsets = [0, 3], sizes = [16, 1], strides = [1, 1]} : vector<16x4xf32> to vector<16x1xf32>
    %300 = vector.extract_strided_slice %223 {offsets = [3, 0], sizes = [1, 16], strides = [1, 1]} : vector<4x16xf32> to vector<1x16xf32>
    %301 = vector.broadcast %299 : vector<16x1xf32> to vector<16x16xf32>
    %302 = vector.broadcast %300 : vector<1x16xf32> to vector<16x16xf32>
    %303 = arith.addf %301, %302 : vector<16x16xf32>
    %cst_80 = arith.constant 0.000000e+00 : f32
    %304 = vector.broadcast %cst_80 : f32 to vector<16x16xf32>
    %305 = arith.cmpf ogt, %303, %304 : vector<16x16xf32>
    %cst_81 = arith.constant 2.000000e-01 : f32
    %306 = vector.broadcast %cst_81 : f32 to vector<16x16xf32>
    %307 = arith.mulf %306, %303 : vector<16x16xf32>
    %308 = arith.select %305, %303, %307 : vector<16x16xi1>, vector<16x16xf32>
    %309 = arith.addf %308, %0 : vector<16x16xf32>
    %cst_82 = arith.constant dense<0xFF800000> : vector<16xf32>
    %310 = vector.multi_reduction <maximumf>, %309, %cst_82 [1] : vector<16x16xf32> to vector<16xf32>
    %311 = vector.shape_cast %310 : vector<16xf32> to vector<16x1xf32>
    %312 = vector.broadcast %311 : vector<16x1xf32> to vector<16x16xf32>
    %313 = arith.subf %309, %312 : vector<16x16xf32>
    %314 = math.exp %313 : vector<16x16xf32>
    %cst_83 = arith.constant dense<0.000000e+00> : vector<16xf32>
    %315 = vector.multi_reduction <add>, %314, %cst_83 [1] : vector<16x16xf32> to vector<16xf32>
    %316 = vector.shape_cast %315 : vector<16xf32> to vector<16x1xf32>
    %317 = tpu.reciprocal %316 {approx = true} : vector<16x1xf32> -> vector<16x1xf32>
    %318 = vector.broadcast %317 : vector<16x1xf32> to vector<16x16xf32>
    %319 = arith.mulf %314, %318 : vector<16x16xf32>
    %320 = vector.extract_strided_slice %224 {offsets = [0, 96], sizes = [16, 32], strides = [1, 1]} : vector<16x128xbf16> to vector<16x32xbf16>
    %321 = arith.truncf %319 : vector<16x16xf32> to vector<16x16xbf16>
    %cst_84 = arith.constant dense<0.000000e+00> : vector<16x32xf32>
    %322 = tpu.matmul %321, %320, %cst_84 {dimension_numbers = #tpu.dot_dimension_numbers<[1], [0], [0], [1], [0, 0, 1, 1], [], []>} : vector<16x16xbf16>, vector<16x32xbf16>, vector<16x32xf32> -> vector<16x32xf32>
    %323 = arith.addf %298, %322 : vector<16x32xf32>
    %c0_85 = arith.constant 0 : index
    %c0_86 = arith.constant 0 : index
    %324 = vector.load %arg10[%c0_85, %c0_86] : memref<1x32xf32, #tpu.memory_space<vmem>>, vector<1x32xf32>
    %325 = vector.broadcast %324 : vector<1x32xf32> to vector<16x32xf32>
    %326 = arith.mulf %323, %325 : vector<16x32xf32>
    %c0_87 = arith.constant 0 : index
    %c0_88 = arith.constant 0 : index
    %327 = vector.load %arg11[%c0_87, %c0_88] : memref<1x32xf32, #tpu.memory_space<vmem>>, vector<1x32xf32>
    %328 = vector.broadcast %327 : vector<1x32xf32> to vector<16x32xf32>
    %329 = arith.addf %326, %328 : vector<16x32xf32>
    %cst_89 = arith.constant 0.000000e+00 : f32
    %330 = vector.broadcast %cst_89 : f32 to vector<16x32xf32>
    %331 = arith.maximumf %329, %330 : vector<16x32xf32>
    %c0_90 = arith.constant 0 : index
    %c0_91 = arith.constant 0 : index
    %332 = vector.load %arg12[%c0_90, %c0_91] : memref<32x32xbf16, #tpu.memory_space<vmem>>, vector<32x32xbf16>
    %c0_92 = arith.constant 0 : index
    %c0_93 = arith.constant 0 : index
    %333 = vector.load %arg13[%c0_92, %c0_93] : memref<32x4xf32, #tpu.memory_space<vmem>>, vector<32x4xf32>
    %c0_94 = arith.constant 0 : index
    %c0_95 = arith.constant 0 : index
    %334 = vector.load %arg14[%c0_94, %c0_95] : memref<4x32xf32, #tpu.memory_space<vmem>>, vector<4x32xf32>
    %335 = arith.truncf %331 : vector<16x32xf32> to vector<16x32xbf16>
    %cst_96 = arith.constant dense<0.000000e+00> : vector<16x32xf32>
    %336 = tpu.matmul %335, %332, %cst_96 {dimension_numbers = #tpu.dot_dimension_numbers<[1], [0], [0], [1], [0, 0, 1, 1], [], []>} : vector<16x32xbf16>, vector<32x32xbf16>, vector<16x32xf32> -> vector<16x32xf32>
    %cst_97 = arith.constant dense<0.000000e+00> : vector<16x4xf32>
    %337 = tpu.matmul %336, %333, %cst_97 {dimension_numbers = #tpu.dot_dimension_numbers<[1], [0], [0], [1], [0, 0, 1, 1], [], []>} : vector<16x32xf32>, vector<32x4xf32>, vector<16x4xf32> -> vector<16x4xf32>
    %cst_98 = arith.constant dense<0.000000e+00> : vector<4x16xf32>
    %338 = tpu.matmul %334, %336, %cst_98 {dimension_numbers = #tpu.dot_dimension_numbers<[1], [1], [0], [0], [0, 0, 1, 0], [], []>} : vector<4x32xf32>, vector<16x32xf32>, vector<4x16xf32> -> vector<4x16xf32>
    %339 = arith.truncf %336 : vector<16x32xf32> to vector<16x32xbf16>
    %340 = vector.extract_strided_slice %337 {offsets = [0, 0], sizes = [16, 1], strides = [1, 1]} : vector<16x4xf32> to vector<16x1xf32>
    %341 = vector.extract_strided_slice %338 {offsets = [0, 0], sizes = [1, 16], strides = [1, 1]} : vector<4x16xf32> to vector<1x16xf32>
    %342 = vector.broadcast %340 : vector<16x1xf32> to vector<16x16xf32>
    %343 = vector.broadcast %341 : vector<1x16xf32> to vector<16x16xf32>
    %344 = arith.addf %342, %343 : vector<16x16xf32>
    %cst_99 = arith.constant 0.000000e+00 : f32
    %345 = vector.broadcast %cst_99 : f32 to vector<16x16xf32>
    %346 = arith.cmpf ogt, %344, %345 : vector<16x16xf32>
    %cst_100 = arith.constant 2.000000e-01 : f32
    %347 = vector.broadcast %cst_100 : f32 to vector<16x16xf32>
    %348 = arith.mulf %347, %344 : vector<16x16xf32>
    %349 = arith.select %346, %344, %348 : vector<16x16xi1>, vector<16x16xf32>
    %350 = arith.addf %349, %0 : vector<16x16xf32>
    %cst_101 = arith.constant dense<0xFF800000> : vector<16xf32>
    %351 = vector.multi_reduction <maximumf>, %350, %cst_101 [1] : vector<16x16xf32> to vector<16xf32>
    %352 = vector.shape_cast %351 : vector<16xf32> to vector<16x1xf32>
    %353 = vector.broadcast %352 : vector<16x1xf32> to vector<16x16xf32>
    %354 = arith.subf %350, %353 : vector<16x16xf32>
    %355 = math.exp %354 : vector<16x16xf32>
    %cst_102 = arith.constant dense<0.000000e+00> : vector<16xf32>
    %356 = vector.multi_reduction <add>, %355, %cst_102 [1] : vector<16x16xf32> to vector<16xf32>
    %357 = vector.shape_cast %356 : vector<16xf32> to vector<16x1xf32>
    %358 = tpu.reciprocal %357 {approx = true} : vector<16x1xf32> -> vector<16x1xf32>
    %359 = vector.broadcast %358 : vector<16x1xf32> to vector<16x16xf32>
    %360 = arith.mulf %355, %359 : vector<16x16xf32>
    %361 = vector.extract_strided_slice %339 {offsets = [0, 0], sizes = [16, 8], strides = [1, 1]} : vector<16x32xbf16> to vector<16x8xbf16>
    %362 = arith.truncf %360 : vector<16x16xf32> to vector<16x16xbf16>
    %cst_103 = arith.constant dense<0.000000e+00> : vector<16x8xf32>
    %363 = tpu.matmul %362, %361, %cst_103 {dimension_numbers = #tpu.dot_dimension_numbers<[1], [0], [0], [1], [0, 0, 1, 1], [], []>} : vector<16x16xbf16>, vector<16x8xbf16>, vector<16x8xf32> -> vector<16x8xf32>
    %364 = vector.extract_strided_slice %337 {offsets = [0, 1], sizes = [16, 1], strides = [1, 1]} : vector<16x4xf32> to vector<16x1xf32>
    %365 = vector.extract_strided_slice %338 {offsets = [1, 0], sizes = [1, 16], strides = [1, 1]} : vector<4x16xf32> to vector<1x16xf32>
    %366 = vector.broadcast %364 : vector<16x1xf32> to vector<16x16xf32>
    %367 = vector.broadcast %365 : vector<1x16xf32> to vector<16x16xf32>
    %368 = arith.addf %366, %367 : vector<16x16xf32>
    %cst_104 = arith.constant 0.000000e+00 : f32
    %369 = vector.broadcast %cst_104 : f32 to vector<16x16xf32>
    %370 = arith.cmpf ogt, %368, %369 : vector<16x16xf32>
    %cst_105 = arith.constant 2.000000e-01 : f32
    %371 = vector.broadcast %cst_105 : f32 to vector<16x16xf32>
    %372 = arith.mulf %371, %368 : vector<16x16xf32>
    %373 = arith.select %370, %368, %372 : vector<16x16xi1>, vector<16x16xf32>
    %374 = arith.addf %373, %0 : vector<16x16xf32>
    %cst_106 = arith.constant dense<0xFF800000> : vector<16xf32>
    %375 = vector.multi_reduction <maximumf>, %374, %cst_106 [1] : vector<16x16xf32> to vector<16xf32>
    %376 = vector.shape_cast %375 : vector<16xf32> to vector<16x1xf32>
    %377 = vector.broadcast %376 : vector<16x1xf32> to vector<16x16xf32>
    %378 = arith.subf %374, %377 : vector<16x16xf32>
    %379 = math.exp %378 : vector<16x16xf32>
    %cst_107 = arith.constant dense<0.000000e+00> : vector<16xf32>
    %380 = vector.multi_reduction <add>, %379, %cst_107 [1] : vector<16x16xf32> to vector<16xf32>
    %381 = vector.shape_cast %380 : vector<16xf32> to vector<16x1xf32>
    %382 = tpu.reciprocal %381 {approx = true} : vector<16x1xf32> -> vector<16x1xf32>
    %383 = vector.broadcast %382 : vector<16x1xf32> to vector<16x16xf32>
    %384 = arith.mulf %379, %383 : vector<16x16xf32>
    %385 = vector.extract_strided_slice %339 {offsets = [0, 8], sizes = [16, 8], strides = [1, 1]} : vector<16x32xbf16> to vector<16x8xbf16>
    %386 = arith.truncf %384 : vector<16x16xf32> to vector<16x16xbf16>
    %cst_108 = arith.constant dense<0.000000e+00> : vector<16x8xf32>
    %387 = tpu.matmul %386, %385, %cst_108 {dimension_numbers = #tpu.dot_dimension_numbers<[1], [0], [0], [1], [0, 0, 1, 1], [], []>} : vector<16x16xbf16>, vector<16x8xbf16>, vector<16x8xf32> -> vector<16x8xf32>
    %388 = arith.addf %363, %387 : vector<16x8xf32>
    %389 = vector.extract_strided_slice %337 {offsets = [0, 2], sizes = [16, 1], strides = [1, 1]} : vector<16x4xf32> to vector<16x1xf32>
    %390 = vector.extract_strided_slice %338 {offsets = [2, 0], sizes = [1, 16], strides = [1, 1]} : vector<4x16xf32> to vector<1x16xf32>
    %391 = vector.broadcast %389 : vector<16x1xf32> to vector<16x16xf32>
    %392 = vector.broadcast %390 : vector<1x16xf32> to vector<16x16xf32>
    %393 = arith.addf %391, %392 : vector<16x16xf32>
    %cst_109 = arith.constant 0.000000e+00 : f32
    %394 = vector.broadcast %cst_109 : f32 to vector<16x16xf32>
    %395 = arith.cmpf ogt, %393, %394 : vector<16x16xf32>
    %cst_110 = arith.constant 2.000000e-01 : f32
    %396 = vector.broadcast %cst_110 : f32 to vector<16x16xf32>
    %397 = arith.mulf %396, %393 : vector<16x16xf32>
    %398 = arith.select %395, %393, %397 : vector<16x16xi1>, vector<16x16xf32>
    %399 = arith.addf %398, %0 : vector<16x16xf32>
    %cst_111 = arith.constant dense<0xFF800000> : vector<16xf32>
    %400 = vector.multi_reduction <maximumf>, %399, %cst_111 [1] : vector<16x16xf32> to vector<16xf32>
    %401 = vector.shape_cast %400 : vector<16xf32> to vector<16x1xf32>
    %402 = vector.broadcast %401 : vector<16x1xf32> to vector<16x16xf32>
    %403 = arith.subf %399, %402 : vector<16x16xf32>
    %404 = math.exp %403 : vector<16x16xf32>
    %cst_112 = arith.constant dense<0.000000e+00> : vector<16xf32>
    %405 = vector.multi_reduction <add>, %404, %cst_112 [1] : vector<16x16xf32> to vector<16xf32>
    %406 = vector.shape_cast %405 : vector<16xf32> to vector<16x1xf32>
    %407 = tpu.reciprocal %406 {approx = true} : vector<16x1xf32> -> vector<16x1xf32>
    %408 = vector.broadcast %407 : vector<16x1xf32> to vector<16x16xf32>
    %409 = arith.mulf %404, %408 : vector<16x16xf32>
    %410 = vector.extract_strided_slice %339 {offsets = [0, 16], sizes = [16, 8], strides = [1, 1]} : vector<16x32xbf16> to vector<16x8xbf16>
    %411 = arith.truncf %409 : vector<16x16xf32> to vector<16x16xbf16>
    %cst_113 = arith.constant dense<0.000000e+00> : vector<16x8xf32>
    %412 = tpu.matmul %411, %410, %cst_113 {dimension_numbers = #tpu.dot_dimension_numbers<[1], [0], [0], [1], [0, 0, 1, 1], [], []>} : vector<16x16xbf16>, vector<16x8xbf16>, vector<16x8xf32> -> vector<16x8xf32>
    %413 = arith.addf %388, %412 : vector<16x8xf32>
    %414 = vector.extract_strided_slice %337 {offsets = [0, 3], sizes = [16, 1], strides = [1, 1]} : vector<16x4xf32> to vector<16x1xf32>
    %415 = vector.extract_strided_slice %338 {offsets = [3, 0], sizes = [1, 16], strides = [1, 1]} : vector<4x16xf32> to vector<1x16xf32>
    %416 = vector.broadcast %414 : vector<16x1xf32> to vector<16x16xf32>
    %417 = vector.broadcast %415 : vector<1x16xf32> to vector<16x16xf32>
    %418 = arith.addf %416, %417 : vector<16x16xf32>
    %cst_114 = arith.constant 0.000000e+00 : f32
    %419 = vector.broadcast %cst_114 : f32 to vector<16x16xf32>
    %420 = arith.cmpf ogt, %418, %419 : vector<16x16xf32>
    %cst_115 = arith.constant 2.000000e-01 : f32
    %421 = vector.broadcast %cst_115 : f32 to vector<16x16xf32>
    %422 = arith.mulf %421, %418 : vector<16x16xf32>
    %423 = arith.select %420, %418, %422 : vector<16x16xi1>, vector<16x16xf32>
    %424 = arith.addf %423, %0 : vector<16x16xf32>
    %cst_116 = arith.constant dense<0xFF800000> : vector<16xf32>
    %425 = vector.multi_reduction <maximumf>, %424, %cst_116 [1] : vector<16x16xf32> to vector<16xf32>
    %426 = vector.shape_cast %425 : vector<16xf32> to vector<16x1xf32>
    %427 = vector.broadcast %426 : vector<16x1xf32> to vector<16x16xf32>
    %428 = arith.subf %424, %427 : vector<16x16xf32>
    %429 = math.exp %428 : vector<16x16xf32>
    %cst_117 = arith.constant dense<0.000000e+00> : vector<16xf32>
    %430 = vector.multi_reduction <add>, %429, %cst_117 [1] : vector<16x16xf32> to vector<16xf32>
    %431 = vector.shape_cast %430 : vector<16xf32> to vector<16x1xf32>
    %432 = tpu.reciprocal %431 {approx = true} : vector<16x1xf32> -> vector<16x1xf32>
    %433 = vector.broadcast %432 : vector<16x1xf32> to vector<16x16xf32>
    %434 = arith.mulf %429, %433 : vector<16x16xf32>
    %435 = vector.extract_strided_slice %339 {offsets = [0, 24], sizes = [16, 8], strides = [1, 1]} : vector<16x32xbf16> to vector<16x8xbf16>
    %436 = arith.truncf %434 : vector<16x16xf32> to vector<16x16xbf16>
    %cst_118 = arith.constant dense<0.000000e+00> : vector<16x8xf32>
    %437 = tpu.matmul %436, %435, %cst_118 {dimension_numbers = #tpu.dot_dimension_numbers<[1], [0], [0], [1], [0, 0, 1, 1], [], []>} : vector<16x16xbf16>, vector<16x8xbf16>, vector<16x8xf32> -> vector<16x8xf32>
    %438 = arith.addf %413, %437 : vector<16x8xf32>
    %c0_119 = arith.constant 0 : index
    %c0_120 = arith.constant 0 : index
    %439 = vector.load %arg15[%c0_119, %c0_120] : memref<1x8xf32, #tpu.memory_space<vmem>>, vector<1x8xf32>
    %440 = vector.broadcast %439 : vector<1x8xf32> to vector<16x8xf32>
    %441 = arith.mulf %438, %440 : vector<16x8xf32>
    %c0_121 = arith.constant 0 : index
    %c0_122 = arith.constant 0 : index
    %442 = vector.load %arg16[%c0_121, %c0_122] : memref<1x8xf32, #tpu.memory_space<vmem>>, vector<1x8xf32>
    %443 = vector.broadcast %442 : vector<1x8xf32> to vector<16x8xf32>
    %444 = arith.addf %441, %443 : vector<16x8xf32>
    %c0_123 = arith.constant 0 : index
    %c0_124 = arith.constant 0 : index
    %445 = vector.load %arg17[%c0_123, %c0_124] : memref<16x8xf32, #tpu.memory_space<vmem>>, vector<16x8xf32>
    tpu.vector_store %arg17[%c0_123, %c0_124], %444 {strides = array<i32>} : memref<16x8xf32, #tpu.memory_space<vmem>>, vector<16x8xf32>,
    return
  }
}

</mosaic_0001>

<bundles_post_ra>
// kernel: tpu_custom_call.1
= control target key start
LH: loop header
LB: loop body
LE: loop exit
PB: predicated region body
PF: predicated region fallthrough
CT: control target
= control target key end

     0   :  { %vm106_vm0 = vcmask 1043456   ;;  %vm102_vm1 = vcmask 64512   ;;  %s1720_s22 = smov 32   ;;  %s1721_s25 = smov 64   ;;  %v1723_v56 = vmov 2   ;;  %v1724_v57 = vmov 1   ;;  %s2407_s2 = inlined_call_operand.vmem [shape: bf16[8,256], index: 2, kind: input, shape index: {}]   ;;  %s2408_s0 = inlined_call_operand.vmem [shape: f32[16,8], index: 0, kind: input, shape index: {}]   ;;  %s2409_s3 = inlined_call_operand.vmem [shape: f32[256,8], index: 3, kind: input, shape index: {}]   ;;  %s2410_s4 = inlined_call_operand.vmem [shape: f32[8,256], index: 4, kind: input, shape index: {}]   ;;  %s2411_s1 = inlined_call_operand.vmem [shape: f32[16,16], index: 1, kind: input, shape index: {}]   ;;  %s2412_s5 = inlined_call_operand.vmem [shape: f32[1,32], index: 5, kind: input, shape index: {}]   ;;  %s2413_s6 = inlined_call_operand.vmem [shape: f32[1,32], index: 6, kind: input, shape index: {}]   ;;  %s2414_s7 = inlined_call_operand.vmem [shape: bf16[32,128], index: 7, kind: input, shape index: {}]   ;;  %s2415_s8 = inlined_call_operand.vmem [shape: f32[128,4], index: 8, kind: input, shape index: {}]   ;;  %s2416_s9 = inlined_call_operand.vmem [shape: f32[4,128], index: 9, kind: input, shape index: {}]   ;;  %s2417_s10 = inlined_call_operand.vmem [shape: f32[1,32], index: 10, kind: input, shape index: {}]   ;;  %s2418_s11 = inlined_call_operand.vmem [shape: f32[1,32], index: 11, kind: input, shape index: {}]   ;;  %s2419_s12 = inlined_call_operand.vmem [shape: bf16[32,32], index: 12, kind: input, shape index: {}]   ;;  %s2420_s13 = inlined_call_operand.vmem [shape: f32[32,4], index: 13, kind: input, shape index: {}]   ;;  %s2421_s14 = inlined_call_operand.vmem [shape: f32[4,32], index: 14, kind: input, shape index: {}]   ;;  %s2422_s15 = inlined_call_operand.vmem [shape: f32[1,8], index: 15, kind: input, shape index: {}]   ;;  %s2423_s16 = inlined_call_operand.vmem [shape: f32[1,8], index: 16, kind: input, shape index: {}]   ;;  %s2424_s17 = inlined_call_operand.vmem [shape: f32[16,8], index: 17, kind: output, shape index: {}]  }
   0x1   :  { %2426 = sst [smem:[#allocation2_spill]] %s2407_s2  ;;  %v77_v3 = vld [vmem:[%s2409_s3 + $0x78] sm:$0xff]  ;;  %v76_v5 = vld [vmem:[%s2409_s3 + $0x70] sm:$0xff]  ;;  %v75_v11 = vld [vmem:[%s2409_s3 + $0x68] sm:$0xff]  ;;  %1555 = vset.pattern.permute.xlu2 %v1723_v56  ;;  %1553 = vset.pattern.permute.xlu0 %v1724_v57  ;;  %v1725_v58 = vmov 0   ;;  %vm250_vm3 = vcmask 130048  }
   0x2   :  { %2427 = sst [smem:[#allocation3_spill]] %s2408_s0  ;;  %v93_v4 = vld [vmem:[%s2409_s3 + $0xf8] sm:$0xff]  ;;  %141 = vmatpush.msra.mxu2 %v77_v3  ;;  %v92_v8 = vld [vmem:[%s2409_s3 + $0xf0] sm:$0xff]  ;;  %v91_v12 = vld [vmem:[%s2409_s3 + $0xe8] sm:$0xff]  ;;  %1554 = vset.pattern.permute.xlu1 %v1725_v58  ;;  %v1728_v3 = vmov 6  }
   0x3   :  { %s2428_s26 = sld [smem:[#allocation2_spill]]  ;;  %164 = vmatpush.msra.mxu3 %v93_v4  ;;  %v74_v16 = vld [vmem:[%s2409_s3 + $0x60] sm:$0xff]  ;;  %v73_v18 = vld [vmem:[%s2409_s3 + $0x58] sm:$0xff]  ;;  %v72_v20 = vld [vmem:[%s2409_s3 + $0x50] sm:$0xff] }
   0x4   :  { %s2429_s20 = sld [smem:[#allocation3_spill]]  ;;  %142 = vmatpush.msra.mxu2 %v76_v5  ;;  %v90_v17 = vld [vmem:[%s2409_s3 + $0xe0] sm:$0xff]  ;;  %v89_v19 = vld [vmem:[%s2409_s3 + $0xd8] sm:$0xff]  ;;  %v88_v21 = vld [vmem:[%s2409_s3 + $0xd0] sm:$0xff] }
   0x5   :  { %165 = vmatpush.msra.mxu3 %v92_v8  ;;  %v71_v22 = vld [vmem:[%s2409_s3 + $0x48] sm:$0xff]  ;;  %v70_v24 = vld [vmem:[%s2409_s3 + $0x40] sm:$0xff]  ;;  %v69_v26 = vld [vmem:[%s2409_s3 + $0x38] sm:$0xff]  ;;  %v1730_v8 = vmov 7  }
   0x6   :  { %143 = vmatpush.msra.mxu2 %v75_v11  ;;  %v87_v23 = vld [vmem:[%s2409_s3 + $0xc8] sm:$0xff]  ;;  %v86_v25 = vld [vmem:[%s2409_s3 + $0xc0] sm:$0xff]  ;;  %v85_v27 = vld [vmem:[%s2409_s3 + $0xb8] sm:$0xff] }
   0x7   :  { %166 = vmatpush.msra.mxu3 %v91_v12  ;;  %v68_v28 = vld [vmem:[%s2409_s3 + $0x30] sm:$0xff]  ;;  %v67_v30 = vld [vmem:[%s2409_s3 + $0x28] sm:$0xff]  ;;  %v66_v32 = vld [vmem:[%s2409_s3 + $0x20] sm:$0xff] }
   0x8   :  { %144 = vmatpush.msra.mxu2 %v74_v16  ;;  %v84_v29 = vld [vmem:[%s2409_s3 + $0xb0] sm:$0xff]  ;;  %v83_v31 = vld [vmem:[%s2409_s3 + $0xa8] sm:$0xff]  ;;  %v82_v33 = vld [vmem:[%s2409_s3 + $0xa0] sm:$0xff] }
   0x9   :  { %v61_v0 = vld [vmem:[%s2428_s26] sm:$0xff]  ;;  %167 = vmatpush.msra.mxu3 %v90_v17  ;;  %v65_v34 = vld [vmem:[%s2409_s3 + $0x18] sm:$0xff]  ;;  %v64_v36 = vld [vmem:[%s2409_s3 + $0x10] sm:$0xff]  ;;  %s1722_s26 = smov 96  }
   0xa   :  { %v98_v1 = vunpack.c.l.b16 %v61_v0  ;;  %v99_v2 = vunpack.c.h.b16 %v61_v0  ;;  %v59_v6 = vld [vmem:[%s2429_s20] sm:$0xff]  ;;  %v60_v7 = vld [vmem:[%s2429_s20 + $0x8] sm:$0xff]  ;;  %145 = vmatpush.msra.mxu2 %v73_v18  ;;  %v81_v35 = vld [vmem:[%s2409_s3 + $0x98] sm:$0xff]  ;;  %s1732_s20 = smov 104  }
   0xb   :  { %v96_v15 = vpack.c.bf16 %v60_v7, %v59_v6  ;;  %168 = vmatpush.msra.mxu3 %v89_v19  ;;  %v80_v37 = vld [vmem:[%s2409_s3 + $0x90] sm:$0xff]  ;;  %v63_v38 = vld [vmem:[%s2409_s3 + $0x8] sm:$0xff]  ;;  %v62_v40 = vld [vmem:[%s2409_s3] sm:$0xff]  ;;  %v1729_v6 = vmov 5  }
   0xc   :  { %v100_v9 = vpack.c.b16 %v98_v1, %v98_v1  ;;  %v101_v10 = vpack.c.b16 %v99_v2, %v99_v2  ;;  %146 = vmatpush.msra.mxu2 %v72_v20  ;;  %v79_v39 = vld [vmem:[%s2409_s3 + $0x88] sm:$0xff]  ;;  %v78_v41 = vld [vmem:[%s2409_s3 + $0x80] sm:$0xff]  ;;  %v1726_v1 = vmov 4   ;;  %v1727_v2 = vmov 3   ;;  %s1733_s3 = smov 120  }
   0xd   :  { %169 = vmatpush.msra.mxu3 %v88_v21  ;;  %v94_v54 = vld [vmem:[%s2410_s4] sm:$0xff]  ;;  %v95_v55 = vld [vmem:[%s2410_s4 + $0x8] sm:$0xff] }
   0xe   :  { %v108_v13 = vsel %vm106_vm0, %v100_v9, 0  ;;  %v111_v14 = vsel %vm106_vm0, %v101_v10, 0  ;;  %147 = vmatpush.msra.mxu2 %v71_v22  ;;  %v1962_v17 = vld [vmem:[%s2411_s1] sm:$0xff] }
   0xf   :  { %120 = vmatpush.bf16.msra.mxu0 %v108_v13  ;;  %134 = vmatpush.bf16.msra.mxu1 %v111_v14 }
  0x10   :  { %170 = vmatpush.msra.mxu3 %v87_v23  ;;  %148 = vmatpush.msra.mxu2 %v70_v24 }
  0x12   :  { %1494 = vmatmul.msk.bf16.vlgmr.msra.gmra.mxu0 %vm102_vm1, %v96_v15  ;;  %1495 = vmatmul.msk.bf16.vlgmr.msra.gmra.mxu1 %vm102_vm1, %v96_v15 }
  0x13   :  { %171 = vmatpush.msra.mxu3 %v86_v25  ;;  %149 = vmatpush.msra.mxu2 %v69_v26 }
  0x15   :  { %172 = vmatpush.msra.mxu3 %v85_v27  ;;  %150 = vmatpush.msra.mxu2 %v68_v28 }
  0x17   :  { %173 = vmatpush.msra.mxu3 %v84_v29  ;;  %151 = vmatpush.msra.mxu2 %v67_v30 }
  0x19   :  { %174 = vmatpush.msra.mxu3 %v83_v31  ;;  %152 = vmatpush.msra.mxu2 %v66_v32 }
  0x1b   :  { %175 = vmatpush.msra.mxu3 %v82_v33  ;;  %153 = vmatpush.msra.mxu2 %v65_v34 }
  0x1d   :  { %176 = vmatpush.msra.mxu3 %v81_v35  ;;  %154 = vmatpush.msra.mxu2 %v64_v36 }
  0x1f   :  { %177 = vmatpush.msra.mxu3 %v80_v37  ;;  %155 = vmatpush.msra.mxu2 %v63_v38 }
  0x21   :  { %178 = vmatpush.msra.mxu3 %v79_v39  ;;  %156 = vmatpush.msra.mxu2 %v62_v40 }
  0x23   :  { %179 = vmatpush.msra.mxu3 %v78_v41 }
  0x8f   :  { %v122_v42 = vpop.f32.mrf.mxu0  ;;  %v136_v43 = vpop.f32.mrf.mxu1 }
  0x90   :  { %157 = vmatmul.f32.vlgmr.msra.gmra.mxu2 %v122_v42  ;;  %180 = vmatmul.f32.vlgmr.msra.gmra.mxu3 %v136_v43  ;;  %v227_v44 = vpack.c.bf16 %v136_v43, %v122_v42 }
  0x92   :  { %v318_v48 = vunpack.c.l.b16 %v227_v44  ;;  %v529_v49 = vunpack.c.h.b16 %v227_v44 }
  0x97   :  { %v124_v45 = vpop.f32.mrf.mxu0  ;;  %v138_v46 = vpop.f32.mrf.mxu1 }
  0x98   :  { %v228_v47 = vpack.c.bf16 %v138_v46, %v124_v45  ;;  %160 = vmatmul.f32.gmra.mxu2 %v124_v45  ;;  %183 = vmatmul.f32.gmra.mxu3 %v138_v46 }
  0x99   :  { %201 = vmatpush.xpose.msrb.mxu0 %v124_v45  ;;  %221 = vmatpush.xpose.msrb.mxu1 %v138_v46 }
  0x9a   :  { %v319_v50 = vunpack.c.l.b16 %v228_v47  ;;  %v530_v51 = vunpack.c.h.b16 %v228_v47 }
  0x9c   :  { %v1931_v52 = vpack.c.b16 %v530_v51, %v529_v49  ;;  %v320_v53 = vpack.c.b16 %v319_v50, %v318_v48 }
  0x9d   :  { %202 = vmatpush.xpose.msrb.mxu0 %v122_v42  ;;  %222 = vmatpush.xpose.msrb.mxu1 %v136_v43 }
  0x9e   :  { %543 = vmatpush.bf16.msrb.mxu2 %v1931_v52  ;;  %465 = vrot.lane.b32.xlu2 %v320_v53, %s1720_s22 }
  0x9f   :  { %401 = vrot.lane.b32.xlu0 %v320_v53, %s1721_s25  ;;  %321 = vrot.lane.b32.xlu1 %v320_v53, %s1722_s26 }
  0xa0   :  { %203 = vmatmul.f32.vlgmr.msrb.gmra.mxu0 %v94_v54  ;;  %223 = vmatmul.f32.vlgmr.msrb.gmra.mxu1 %v95_v55 }
  0xa1   :  { %352 = vmatpush.bf16.msra.mxu1 %v320_v53 }
  0xf8   :  { %v466_v59 = vpop.permute.xlu2 %465 }
  0xf9   :  { %478 = vmatpush.bf16.msrb.mxu1 %v466_v59 }
 0x111   :  { %v402_v60 = vpop.permute.xlu0 %401  ;;  %v322_v61 = vpop.permute.xlu1 %321 }
 0x112   :  { %334 = vmatpush.bf16.msra.mxu0 %v322_v61 }
 0x113   :  { %v158_v62 = vpop.f32.mrf.mxu2  ;;  %v181_v63 = vpop.f32.mrf.mxu3 }
 0x114   :  { %v182_v0 = vadd.f32 %v181_v63, %v158_v62 }
 0x116   :  { %414 = vmatpush.bf16.msrb.mxu0 %v402_v60  ;;  %360 = vperm.xlu2 %1555, %v182_v0  }
 0x117   :  { %275 = vperm.xlu0 %1553, %v182_v0   ;;  %231 = vperm.xlu1 %1554, %v182_v0  }
 0x11b   :  { %v161_v4 = vpop.f32.mrf.mxu2  ;;  %v184_v5 = vpop.f32.mrf.mxu3 }
 0x11c   :  { %v185_v7 = vadd.f32 %v184_v5, %v161_v4 }
 0x11d   :  { %v204_v10 = vpop.f32.mrf.mxu0  ;;  %v224_v11 = vpop.f32.mrf.mxu1 }
 0x11e   :  { %1557 = vset.pattern.permute.xlu2 %v1726_v1  ;;  %v1954_v12 = vadd.f32 %v224_v11, %v204_v10 }
 0x11f   :  { %1556 = vset.pattern.permute.xlu0 %v1727_v2  ;;  %1559 = vset.pattern.permute.xlu1 %v1728_v3 }
 0x120   :  { %488 = vperm.xlu2 %1557, %v182_v0   ;;  %424 = vperm.xlu0 %1556, %v182_v0   ;;  %v495_v13 = vperm.slane %v1954_v12, 4  ;;  %v367_v21 = vperm.slane %v1954_v12, 2  ;;  %v282_v22 = vperm.slane %v1954_v12, 1  ;;  %v239_v23 = vperm.slane %v1954_v12, 0 }
 0x121   :  { %617 = vperm.xlu1 %1559, %v182_v0   ;;  %v560_v32 = vperm.slane %v1954_v12, 5  ;;  %v431_v38 = vperm.slane %v1954_v12, 3  ;;  %v624_v41 = vperm.slane %v1954_v12, 6  ;;  %v688_v60 = vperm.slane %v1954_v12, 7 }
 0x128   :  { %1558 = vset.pattern.permute.xlu2 %v1729_v6  ;;  %1561 = vset.pattern.permute.xlu0 %v1724_v57 }
 0x129   :  { %1560 = vset.pattern.permute.xlu1 %v1730_v8  ;;  %553 = vperm.xlu2 %1558, %v182_v0  }
 0x12a   :  { %681 = vperm.xlu1 %1560, %v182_v0   ;;  %279 = vperm.xlu0 %1561, %v185_v7  }
 0x131   :  { %1563 = vset.pattern.permute.xlu2 %v1723_v56 }
 0x132   :  { %1562 = vset.pattern.permute.xlu1 %v1725_v58  ;;  %1566 = vset.pattern.permute.xlu0 %v1729_v6 }
 0x133   :  { %364 = vperm.xlu2 %1563, %v185_v7   ;;  %236 = vperm.xlu1 %1562, %v185_v7  }
 0x134   :  { %557 = vperm.xlu0 %1566, %v185_v7  }
 0x13b   :  { %1567 = vset.pattern.permute.xlu2 %v1728_v3  ;;  %1564 = vset.pattern.permute.xlu1 %v1727_v2 }
 0x13c   :  { %621 = vperm.xlu2 %1567, %v185_v7   ;;  %428 = vperm.xlu1 %1564, %v185_v7  }
 0x13d   :  { %1569 = vset.pattern.permute.xlu0 %v1724_v57 }
 0x144   :  { %1568 = vset.pattern.permute.xlu2 %v1730_v8  ;;  %1565 = vset.pattern.permute.xlu1 %v1726_v1 }
 0x145   :  { %685 = vperm.xlu2 %1568, %v185_v7   ;;  %492 = vperm.xlu1 %1565, %v185_v7  }
 0x14d   :  { %1572 = vset.pattern.permute.xlu2 %v1724_v57  ;;  %1570 = vset.pattern.permute.xlu1 %v1725_v58 }
 0x170   :  { %v361_v9 = vpop.permute.xlu2 %360 }
 0x171   :  { %v368_v25 = vadd.f32 %v367_v21, %v361_v9 }
 0x173   :  { %v372_v31 = vmul.f32 0.2, %v368_v25  ;;  %vm370_vm6 = vcmp.gt.f32.partialorder %v368_v25, 0.0 }
 0x175   :  { %v374_v43 = vsel %vm370_vm6, %v368_v25, %v372_v31 }
 0x176   :  { %v1996_v48 = vadd.f32 %v374_v43, %v1962_v17 }
 0x178   :  { %v378_v54 = vsel %vm250_vm3, %v1996_v48, -inf }
 0x17a   :  { %v489_v14 = vpop.permute.xlu2 %488 }
 0x17b   :  { %v496_v15 = vadd.f32 %v495_v13, %v489_v14 }
 0x17d   :  { %vm498_vm2 = vcmp.gt.f32.partialorder %v496_v15, 0.0  ;;  %v500_v16 = vmul.f32 0.2, %v496_v15 }
 0x17f   :  { %v502_v18 = vsel %vm498_vm2, %v496_v15, %v500_v16 }
 0x180   :  { %v1965_v19 = vadd.f32 %v502_v18, %v1962_v17 }
 0x182   :  { %v506_v20 = vsel %vm250_vm3, %v1965_v19, -inf }
 0x183   :  { %507 = vmax.xlane.f32.xlu1 %v506_v20  ;;  %v554_v34 = vpop.permute.xlu2 %553 }
 0x184   :  { %v561_v40 = vadd.f32 %v560_v32, %v554_v34 }
 0x186   :  { %v565_v49 = vmul.f32 0.2, %v561_v40  ;;  %vm563_vm8 = vcmp.gt.f32.partialorder %v561_v40, 0.0 }
 0x188   :  { %v567_v59 = vsel %vm563_vm8, %v561_v40, %v565_v49 }
 0x189   :  { %v276_v24 = vpop.permute.xlu0 %275  ;;  %v232_v27 = vpop.permute.xlu1 %231  ;;  %v2009_v3 = vadd.f32 %v567_v59, %v1962_v17 }
 0x18a   :  { %v283_v26 = vadd.f32 %v282_v22, %v276_v24  ;;  %v240_v28 = vadd.f32 %v239_v23, %v232_v27  ;;  %v2030_v24 = vld [vmem:[%s2411_s1 + $0x8] sm:$0xff] }
 0x18b   :  { %v571_v8 = vsel %vm250_vm3, %v2009_v3, -inf }
 0x18c   :  { %vm285_vm4 = vcmp.gt.f32.partialorder %v283_v26, 0.0  ;;  %v287_v29 = vmul.f32 0.2, %v283_v26  ;;  %vm242_vm5 = vcmp.gt.f32.partialorder %v240_v28, 0.0  ;;  %v244_v30 = vmul.f32 0.2, %v240_v28 }
 0x18d   :  { %v365_v10 = vpop.permute.xlu2 %364 }
 0x18e   :  { %v289_v33 = vsel %vm285_vm4, %v283_v26, %v287_v29  ;;  %v246_v35 = vsel %vm242_vm5, %v240_v28, %v244_v30  ;;  %v369_v16 = vadd.f32 %v367_v21, %v365_v10  ;;  %vm792_vm5 = vcmask 261120  }
 0x18f   :  { %v1978_v36 = vadd.f32 %v289_v33, %v1962_v17  ;;  %v1981_v37 = vadd.f32 %v246_v35, %v1962_v17 }
 0x190   :  { %v373_v26 = vmul.f32 0.2, %v369_v16  ;;  %vm371_vm13 = vcmp.gt.f32.partialorder %v369_v16, 0.0 }
 0x191   :  { %v293_v39 = vsel %vm250_vm3, %v1978_v36, -inf  ;;  %v251_v42 = vsel %vm250_vm3, %v1981_v37, -inf }
 0x192   :  { %294 = vmax.xlane.f32.xlu0 %v293_v39  ;;  %v425_v44 = vpop.permute.xlu0 %424  ;;  %252 = vmax.xlane.f32.xlu2 %v251_v42  ;;  %v375_v33 = vsel %vm371_vm13, %v369_v16, %v373_v26 }
 0x193   :  { %v618_v45 = vpop.permute.xlu1 %617  ;;  %v432_v46 = vadd.f32 %v431_v38, %v425_v44  ;;  %v2049_v42 = vadd.f32 %v375_v33, %v2030_v24 }
 0x194   :  { %v625_v47 = vadd.f32 %v624_v41, %v618_v45 }
 0x195   :  { %vm434_vm7 = vcmp.gt.f32.partialorder %v432_v46, 0.0  ;;  %v436_v50 = vmul.f32 0.2, %v432_v46  ;;  %v381_v45 = vsel %vm250_vm3, %v2049_v42, -inf }
 0x196   :  { %v629_v51 = vmul.f32 0.2, %v625_v47  ;;  %vm627_vm9 = vcmp.gt.f32.partialorder %v625_v47, 0.0  ;;  %v622_v29 = vpop.permute.xlu2 %621 }
 0x197   :  { %v438_v53 = vsel %vm434_vm7, %v432_v46, %v436_v50  ;;  %v626_v39 = vadd.f32 %v624_v41, %v622_v29 }
 0x198   :  { %v2001_v55 = vadd.f32 %v438_v53, %v1962_v17  ;;  %v631_v63 = vsel %vm627_vm9, %v625_v47, %v629_v51 }
 0x199   :  { %v2012_v6 = vadd.f32 %v631_v63, %v1962_v17  ;;  %v630_v44 = vmul.f32 0.2, %v626_v39  ;;  %vm628_vm0 = vcmp.gt.f32.partialorder %v626_v39, 0.0 }
 0x19a   :  { %379 = vmax.xlane.f32.xlu0 %v378_v54  ;;  %v442_v61 = vsel %vm250_vm3, %v2001_v55, -inf }
 0x19b   :  { %443 = vmax.xlane.f32.xlu2 %v442_v61  ;;  %v635_v14 = vsel %vm250_vm3, %v2012_v6, -inf  ;;  %v632_v53 = vsel %vm628_vm0, %v626_v39, %v630_v44 }
 0x19c   :  { %v682_v62 = vpop.permute.xlu1 %681  ;;  %v280_v1 = vpop.permute.xlu0 %279 }
 0x19d   :  { %v689_v0 = vadd.f32 %v688_v60, %v682_v62  ;;  %v284_v4 = vadd.f32 %v282_v22, %v280_v1  ;;  %v2066_v62 = vadd.f32 %v632_v53, %v2030_v24 }
 0x19f   :  { %vm691_vm10 = vcmp.gt.f32.partialorder %v689_v0, 0.0  ;;  %v693_v5 = vmul.f32 0.2, %v689_v0  ;;  %v288_v7 = vmul.f32 0.2, %v284_v4  ;;  %vm286_vm11 = vcmp.gt.f32.partialorder %v284_v4, 0.0  ;;  %v686_v49 = vpop.permute.xlu2 %685 }
 0x1a0   :  { %v690_v54 = vadd.f32 %v688_v60, %v686_v49  ;;  %v638_v60 = vsel %vm250_vm3, %v2066_v62, -inf }
 0x1a1   :  { %v695_v9 = vsel %vm691_vm10, %v689_v0, %v693_v5  ;;  %v290_v18 = vsel %vm286_vm11, %v284_v4, %v288_v7 }
 0x1a2   :  { %572 = vmax.xlane.f32.xlu0 %v571_v8  ;;  %v2017_v11 = vadd.f32 %v695_v9, %v1962_v17  ;;  %v2033_v25 = vadd.f32 %v290_v18, %v2030_v24  ;;  %v694_v0 = vmul.f32 0.2, %v690_v54  ;;  %vm692_vm4 = vcmp.gt.f32.partialorder %v690_v54, 0.0 }
 0x1a3   :  { %636 = vmax.xlane.f32.xlu2 %v635_v14 }
 0x1a4   :  { %v699_v15 = vsel %vm250_vm3, %v2017_v11, -inf  ;;  %v296_v30 = vsel %vm250_vm3, %v2033_v25, -inf }
 0x1a5   :  { %700 = vmax.xlane.f32.xlu1 %v699_v15  ;;  %v237_v20 = vpop.permute.xlu1 %236 }
 0x1a6   :  { %v241_v22 = vadd.f32 %v239_v23, %v237_v20  ;;  %v558_v28 = vpop.permute.xlu0 %557 }
 0x1a7   :  { %v562_v31 = vadd.f32 %v560_v32, %v558_v28 }
 0x1a8   :  { %vm243_vm12 = vcmp.gt.f32.partialorder %v241_v22, 0.0  ;;  %v245_v27 = vmul.f32 0.2, %v241_v22 }
 0x1a9   :  { %v566_v43 = vmul.f32 0.2, %v562_v31  ;;  %vm564_vm14 = vcmp.gt.f32.partialorder %v562_v31, 0.0 }
 0x1aa   :  { %v247_v21 = vsel %vm243_vm12, %v241_v22, %v245_v27 }
 0x1ab   :  { %v2038_v23 = vadd.f32 %v247_v21, %v2030_v24  ;;  %v568_v41 = vsel %vm564_vm14, %v562_v31, %v566_v43 }
 0x1ac   :  { %v2059_v51 = vadd.f32 %v568_v41, %v2030_v24 }
 0x1ad   :  { %297 = vmax.xlane.f32.xlu1 %v296_v30  ;;  %v254_v34 = vsel %vm250_vm3, %v2038_v23, -inf }
 0x1ae   :  { %255 = vmax.xlane.f32.xlu2 %v254_v34  ;;  %v429_v35 = vpop.permute.xlu1 %428  ;;  %v574_v63 = vsel %vm250_vm3, %v2059_v51, -inf }
 0x1af   :  { %v433_v40 = vadd.f32 %v431_v38, %v429_v35 }
 0x1b1   :  { %vm435_vm15 = vcmp.gt.f32.partialorder %v433_v40, 0.0  ;;  %v437_v32 = vmul.f32 0.2, %v433_v40 }
 0x1b3   :  { %v439_v46 = vsel %vm435_vm15, %v433_v40, %v437_v32 }
 0x1b4   :  { %v2054_v47 = vadd.f32 %v439_v46, %v2030_v24 }
 0x1b5   :  { %382 = vmax.xlane.f32.xlu1 %v381_v45 }
 0x1b6   :  { %v445_v38 = vsel %vm250_vm3, %v2054_v47, -inf }
 0x1b7   :  { %v493_v50 = vpop.permute.xlu1 %492  ;;  %446 = vmax.xlane.f32.xlu0 %v445_v38 }
 0x1b8   :  { %v497_v59 = vadd.f32 %v495_v13, %v493_v50  ;;  %v696_v13 = vsel %vm692_vm4, %v690_v54, %v694_v0 }
 0x1b9   :  { %v2078_v5 = vadd.f32 %v696_v13, %v2030_v24 }
 0x1ba   :  { %vm499_vm2 = vcmp.gt.f32.partialorder %v497_v59, 0.0  ;;  %v501_v61 = vmul.f32 0.2, %v497_v59 }
 0x1bb   :  { %v702_v7 = vsel %vm250_vm3, %v2078_v5, -inf }
 0x1bc   :  { %v503_v1 = vsel %vm499_vm2, %v497_v59, %v501_v61 }
 0x1bd   :  { %575 = vmax.xlane.f32.xlu1 %v574_v63  ;;  %v2071_v4 = vadd.f32 %v503_v1, %v2030_v24 }
 0x1bf   :  { %639 = vmax.xlane.f32.xlu0 %v638_v60  ;;  %v509_v12 = vsel %vm250_vm3, %v2071_v4, -inf }
 0x1c0   :  { %510 = vmax.xlane.f32.xlu2 %v509_v12 }
 0x1c8   :  { %703 = vmax.xlane.f32.xlu2 %v702_v7 }
 0x1f6   :  { %v508_v27 = vpop.xlane.xlu1 %507 }
 0x1f7   :  { %v512_v40 = vsub.f32 %v1965_v19, %v508_v27 }
 0x1f9   :  { %v514_v44 = vmul.f32 1.442695, %v512_v40 }
 0x205   :  { %v295_v8 = vpop.xlane.xlu0 %294  ;;  %v253_v9 = vpop.xlane.xlu2 %252 }
 0x206   :  { %v299_v10 = vsub.f32 %v1978_v36, %v295_v8  ;;  %v257_v14 = vsub.f32 %v1981_v37, %v253_v9 }
 0x208   :  { %v301_v15 = vmul.f32 1.442695, %v299_v10  ;;  %v259_v16 = vmul.f32 1.442695, %v257_v14 }
 0x20a   :  { %1590 = vpow2.f32 %v301_v15 }
 0x20b   :  { %1592 = vpow2.f32 %v259_v16 }
 0x20d   :  { %v380_v18 = vpop.xlane.xlu0 %379 }
 0x20e   :  { %v384_v20 = vsub.f32 %v1996_v48, %v380_v18  ;;  %v444_v22 = vpop.xlane.xlu2 %443 }
 0x20f   :  { %v448_v29 = vsub.f32 %v2001_v55, %v444_v22 }
 0x210   :  { %v2085_v26 = vpop.eup %1590  ;;  %v386_v28 = vmul.f32 1.442695, %v384_v20 }
 0x211   :  { %v2087_v21 = vpop.eup %1592  ;;  %v305_v36 = vsel %vm250_vm3, %v2085_v26, 0.0  ;;  %v450_v30 = vmul.f32 1.442695, %v448_v29 }
 0x212   :  { %1594 = vpow2.f32 %v386_v28  ;;  %v263_v37 = vsel %vm250_vm3, %v2087_v21, 0.0  ;;  %306 = vadd.xlane.f32.xlu0 %v305_v36 }
 0x213   :  { %264 = vadd.xlane.f32.xlu2 %v263_v37  ;;  %1596 = vpow2.f32 %v450_v30 }
 0x215   :  { %v573_v48 = vpop.xlane.xlu0 %572 }
 0x216   :  { %v577_v31 = vsub.f32 %v2009_v3, %v573_v48  ;;  %v637_v33 = vpop.xlane.xlu2 %636 }
 0x217   :  { %v641_v39 = vsub.f32 %v2012_v6, %v637_v33 }
 0x218   :  { %v2095_v34 = vpop.eup %1594  ;;  %v579_v35 = vmul.f32 1.442695, %v577_v31  ;;  %v2098_v55 = vpop.xlane.xlu1 %700 }
 0x219   :  { %v390_v43 = vsel %vm250_vm3, %v2095_v34, 0.0  ;;  %v643_v32 = vmul.f32 1.442695, %v641_v39  ;;  %v2103_v3 = vpop.eup %1596  ;;  %v705_v40 = vsub.f32 %v2017_v11, %v2098_v55 }
 0x21a   :  { %1598 = vpow2.f32 %v579_v35  ;;  %v454_v38 = vsel %vm250_vm3, %v2103_v3, 0.0 }
 0x21b   :  { %391 = vadd.xlane.f32.xlu2 %v390_v43  ;;  %1600 = vpow2.f32 %v643_v32  ;;  %v707_v43 = vmul.f32 1.442695, %v705_v40 }
 0x21c   :  { %1602 = vpow2.f32 %v514_v44 }
 0x220   :  { %v2105_v45 = vpop.eup %1598  ;;  %v298_v46 = vpop.xlane.xlu1 %297 }
 0x221   :  { %v300_v6 = vsub.f32 %v2033_v25, %v298_v46  ;;  %v583_v19 = vsel %vm250_vm3, %v2105_v45, 0.0  ;;  %v2110_v41 = vpop.eup %1600  ;;  %v256_v49 = vpop.xlane.xlu2 %255 }
 0x222   :  { %584 = vadd.xlane.f32.xlu1 %v583_v19  ;;  %v258_v53 = vsub.f32 %v2038_v23, %v256_v49  ;;  %v647_v54 = vsel %vm250_vm3, %v2110_v41, 0.0  ;;  %v2117_v59 = vpop.eup %1602 }
 0x223   :  { %v303_v50 = vmul.f32 1.442695, %v300_v6  ;;  %455 = vadd.xlane.f32.xlu2 %v454_v38  ;;  %648 = vadd.xlane.f32.xlu0 %v647_v54  ;;  %v518_v0 = vsel %vm250_vm3, %v2117_v59, 0.0 }
 0x224   :  { %v261_v25 = vmul.f32 1.442695, %v258_v53 }
 0x225   :  { %1604 = vpow2.f32 %v303_v50 }
 0x226   :  { %1606 = vpow2.f32 %v261_v25 }
 0x228   :  { %v383_v61 = vpop.xlane.xlu1 %382 }
 0x229   :  { %v385_v63 = vsub.f32 %v2049_v42, %v383_v61 }
 0x22a   :  { %v447_v23 = vpop.xlane.xlu0 %446 }
 0x22b   :  { %v2122_v1 = vpop.eup %1604  ;;  %v388_v60 = vmul.f32 1.442695, %v385_v63  ;;  %519 = vadd.xlane.f32.xlu2 %v518_v0  ;;  %v449_v12 = vsub.f32 %v2054_v47, %v447_v23 }
 0x22c   :  { %v308_v13 = vsel %vm250_vm3, %v2122_v1, 0.0  ;;  %v2127_v7 = vpop.eup %1606 }
 0x22d   :  { %1608 = vpow2.f32 %v388_v60  ;;  %309 = vadd.xlane.f32.xlu1 %v308_v13  ;;  %v266_v42 = vsel %vm250_vm3, %v2127_v7, 0.0  ;;  %v452_v8 = vmul.f32 1.442695, %v449_v12 }
 0x22e   :  { %267 = vadd.xlane.f32.xlu0 %v266_v42 }
 0x22f   :  { %1610 = vpow2.f32 %v452_v8 }
 0x230   :  { %v576_v9 = vpop.xlane.xlu1 %575 }
 0x231   :  { %v578_v10 = vsub.f32 %v2059_v51, %v576_v9 }
 0x232   :  { %v640_v16 = vpop.xlane.xlu0 %639 }
 0x233   :  { %v2132_v14 = vpop.eup %1608  ;;  %v581_v15 = vmul.f32 1.442695, %v578_v10  ;;  %v642_v47 = vsub.f32 %v2066_v62, %v640_v16  ;;  %v511_v18 = vpop.xlane.xlu2 %510 }
 0x234   :  { %v393_v20 = vsel %vm250_vm3, %v2132_v14, 0.0  ;;  %v513_v22 = vsub.f32 %v2071_v4, %v511_v18 }
 0x235   :  { %1612 = vpow2.f32 %v581_v15  ;;  %v645_v27 = vmul.f32 1.442695, %v642_v47  ;;  %v2138_v29 = vpop.eup %1610 }
 0x236   :  { %394 = vadd.xlane.f32.xlu0 %v393_v20  ;;  %v516_v28 = vmul.f32 1.442695, %v513_v22  ;;  %v457_v30 = vsel %vm250_vm3, %v2138_v29, 0.0 }
 0x237   :  { %1614 = vpow2.f32 %v645_v27 }
 0x238   :  { %1616 = vpow2.f32 %v516_v28 }
 0x23b   :  { %v2140_v51 = vpop.eup %1612  ;;  %v704_v36 = vpop.xlane.xlu2 %703 }
 0x23c   :  { %v586_v37 = vsel %vm250_vm3, %v2140_v51, 0.0  ;;  %v706_v62 = vsub.f32 %v2078_v5, %v704_v36 }
 0x23d   :  { %587 = vadd.xlane.f32.xlu2 %v586_v37  ;;  %v2147_v4 = vpop.eup %1614 }
 0x23e   :  { %458 = vadd.xlane.f32.xlu0 %v457_v30  ;;  %v709_v48 = vmul.f32 1.442695, %v706_v62  ;;  %v2149_v31 = vpop.eup %1616  ;;  %v650_v33 = vsel %vm250_vm3, %v2147_v4, 0.0 }
 0x23f   :  { %v521_v5 = vsel %vm250_vm3, %v2149_v31, 0.0 }
 0x240   :  { %1618 = vpow2.f32 %v709_v48 }
 0x241   :  { %1620 = vpow2.f32 %v707_v43 }
 0x245   :  { %651 = vadd.xlane.f32.xlu2 %v650_v33 }
 0x246   :  { %594 = vrot.lane.b32.xlu1 %v1931_v52, %s1722_s26  ;;  %522 = vadd.xlane.f32.xlu0 %v521_v5  ;;  %v2157_v35 = vpop.eup %1618 }
 0x247   :  { %v714_v39 = vsel %vm250_vm3, %v2157_v35, 0.0  ;;  %v2167_v32 = vpop.eup %1620 }
 0x248   :  { %v711_v44 = vsel %vm250_vm3, %v2167_v32, 0.0 }
 0x24e   :  { %715 = vadd.xlane.f32.xlu0 %v714_v39 }
 0x25d   :  { %722 = vrot.lane.b32.xlu2 %v1931_v52, %s1720_s22 }
 0x262   :  { %658 = vrot.lane.b32.xlu0 %v1931_v52, %s1721_s25 }
 0x270   :  { %712 = vadd.xlane.f32.xlu1 %v711_v44 }
 0x285   :  { %v307_v6 = vpop.xlane.xlu0 %306 }
 0x286   :  { %v265_v46 = vpop.xlane.xlu2 %264  ;;  %1622 = vrcp.f32 %v307_v6 }
 0x287   :  { %1624 = vrcp.f32 %v265_v46 }
 0x28c   :  { %v1623_v52 = vpop.eup %1622 }
 0x28d   :  { %v1625_v53 = vpop.eup %1624  ;;  %v313_v25 = vmul.f32 %v1623_v52, %v2085_v26  ;;  %v1536_v52 = vld [vmem:[%s2414_s7 + $0x8] sm:$0xff] }
 0x28e   :  { %v392_v19 = vpop.xlane.xlu2 %391  ;;  %v271_v60 = vmul.f32 %v1625_v53, %v2087_v21  ;;  %802 = vmatpush.bf16.msra.mxu2 %v1536_v52 }
 0x295   :  { %v585_v49 = vpop.xlane.xlu1 %584 }
 0x296   :  { %v649_v38 = vpop.xlane.xlu0 %648  ;;  %v456_v50 = vpop.xlane.xlu2 %455 }
 0x29e   :  { %v520_v61 = vpop.xlane.xlu2 %519 }
 0x2a0   :  { %v310_v11 = vpop.xlane.xlu1 %309 }
 0x2a1   :  { %1626 = vrcp.f32 %v310_v11  ;;  %v268_v55 = vpop.xlane.xlu0 %267 }
 0x2a2   :  { %1628 = vrcp.f32 %v268_v55 }
 0x2a7   :  { %v1627_v54 = vpop.eup %1626 }
 0x2a8   :  { %v314_v63 = vmul.f32 %v1627_v54, %v2122_v1  ;;  %v1629_v0 = vpop.eup %1628 }
 0x2a9   :  { %v272_v12 = vmul.f32 %v1629_v0, %v2127_v7  ;;  %v395_v13 = vpop.xlane.xlu0 %394 }
 0x2aa   :  { %v315_v23 = vpack.c.bf16 %v314_v63, %v313_v25  ;;  %1630 = vrcp.f32 %v395_v13  ;;  %v777_v25 = vld [vmem:[%s2415_s8 + $0x78] sm:$0xff] }
 0x2ab   :  { %v273_v42 = vpack.c.bf16 %v272_v12, %v271_v60  ;;  %1632 = vrcp.f32 %v392_v19  ;;  %v775_v60 = vld [vmem:[%s2415_s8 + $0x68] sm:$0xff] }
 0x2ac   :  { %1496 = vmatmul.msk.bf16.vlgmr.msra.gmra.mxu0 %vm250_vm3, %v315_v23  ;;  %1634 = vrcp.f32 %v585_v49  ;;  %v774_v23 = vld [vmem:[%s2415_s8 + $0x60] sm:$0xff] }
 0x2ad   :  { %1497 = vmatmul.msk.bf16.vlgmr.msra.gmra.mxu1 %vm250_vm3, %v273_v42  ;;  %1636 = vrcp.f32 %v456_v50 }
 0x2b0   :  { %v588_v26 = vpop.xlane.xlu2 %587  ;;  %v1631_v1 = vpop.eup %1630 }
 0x2b1   :  { %1638 = vrcp.f32 %v588_v26  ;;  %v459_v8 = vpop.xlane.xlu0 %458  ;;  %v1633_v9 = vpop.eup %1632  ;;  %v399_v7 = vmul.f32 %v1631_v1, %v2132_v14  ;;  %v773_v26 = vld [vmem:[%s2415_s8 + $0x58] sm:$0xff] }
 0x2b2   :  { %1640 = vrcp.f32 %v459_v8  ;;  %v1635_v21 = vpop.eup %1634  ;;  %v398_v16 = vmul.f32 %v1633_v9, %v2095_v34 }
 0x2b3   :  { %v1637_v10 = vpop.eup %1636  ;;  %v591_v47 = vmul.f32 %v1635_v21, %v2105_v45  ;;  %1642 = vrcp.f32 %v520_v61  ;;  %v776_v61 = vld [vmem:[%s2415_s8 + $0x70] sm:$0xff] }
 0x2b4   :  { %v462_v28 = vmul.f32 %v1637_v10, %v2103_v3  ;;  %v400_v36 = vpack.c.bf16 %v399_v7, %v398_v16  ;;  %v772_v10 = vld [vmem:[%s2415_s8 + $0x50] sm:$0xff]  ;;  %v771_v7 = vld [vmem:[%s2415_s8 + $0x48] sm:$0xff] }
 0x2b7   :  { %v1639_v15 = vpop.eup %1638 }
 0x2b8   :  { %v592_v18 = vmul.f32 %v1639_v15, %v2140_v51  ;;  %v595_v20 = vpop.permute.xlu1 %594  ;;  %v652_v22 = vpop.xlane.xlu2 %651 }
 0x2b9   :  { %v1641_v27 = vpop.eup %1640  ;;  %607 = vmatpush.bf16.msrb.mxu3 %v595_v20  ;;  %v523_v62 = vpop.xlane.xlu0 %522 }
 0x2ba   :  { %v463_v37 = vmul.f32 %v1641_v27, %v2138_v29  ;;  %v593_v30 = vpack.c.bf16 %v592_v18, %v591_v47  ;;  %1644 = vrcp.f32 %v523_v62  ;;  %v1643_v34 = vpop.eup %1642  ;;  %v770_v18 = vld [vmem:[%s2415_s8 + $0x40] sm:$0xff]  ;;  %v768_v62 = vld [vmem:[%s2415_s8 + $0x30] sm:$0xff] }
 0x2bb   :  { %v526_v48 = vmul.f32 %v1643_v34, %v2117_v59  ;;  %1646 = vrcp.f32 %v652_v22 }
 0x2bc   :  { %v464_v14 = vpack.c.bf16 %v463_v37, %v462_v28  ;;  %1498 = vmatmul.msk.bf16.vlgmr.msrb.gmra.mxu0 %vm250_vm3, %v400_v36  ;;  %1501 = vmatmul.msk.bf16.vlgmr.msrb.gmra.mxu3 %vm250_vm3, %v593_v30  ;;  %1648 = vrcp.f32 %v649_v38  ;;  %v769_v28 = vld [vmem:[%s2415_s8 + $0x38] sm:$0xff]  ;;  %v1584_v37 = vld [vmem:[%s2412_s5] ss:$0 sm:$0xff] }
 0x2bd   :  { %810 = vmatpush.msra.mxu3 %v777_v25 }
 0x2be   :  { %1499 = vmatmul.msk.bf16.vlgmr.msrb.gmra.mxu1 %vm250_vm3, %v464_v14 }
 0x2bf   :  { %811 = vmatpush.msra.mxu3 %v776_v61 }
 0x2c0   :  { %v723_v45 = vpop.permute.xlu2 %722  ;;  %v1645_v51 = vpop.eup %1644 }
 0x2c1   :  { %735 = vmatpush.bf16.msra.mxu1 %v723_v45  ;;  %v527_v3 = vmul.f32 %v1645_v51, %v2149_v31  ;;  %v716_v29 = vpop.xlane.xlu0 %715  ;;  %v1647_v5 = vpop.eup %1646  ;;  %812 = vmatpush.msra.mxu3 %v775_v60  ;;  %v767_v45 = vld [vmem:[%s2415_s8 + $0x28] sm:$0xff] }
 0x2c2   :  { %v1649_v39 = vpop.eup %1648  ;;  %v656_v40 = vmul.f32 %v1647_v5, %v2147_v4  ;;  %1650 = vrcp.f32 %v716_v29 }
 0x2c3   :  { %v528_v33 = vpack.c.bf16 %v527_v3, %v526_v48  ;;  %v655_v43 = vmul.f32 %v1649_v39, %v2110_v41  ;;  %813 = vmatpush.msra.mxu3 %v774_v23  ;;  %v1585_v3 = vld [vmem:[%s2413_s6] ss:$0 sm:$0xff]  ;;  %v765_v39 = vld [vmem:[%s2415_s8 + $0x18] sm:$0xff] }
 0x2c5   :  { %1500 = vmatmul.msk.bf16.vlgmr.msrb.gmra.mxu2 %vm250_vm3, %v528_v33  ;;  %v657_v46 = vpack.c.bf16 %v656_v40, %v655_v43  ;;  %814 = vmatpush.msra.mxu3 %v773_v26  ;;  %v766_v33 = vld [vmem:[%s2415_s8 + $0x20] sm:$0xff] }
 0x2c7   :  { %815 = vmatpush.msra.mxu3 %v772_v10 }
 0x2c8   :  { %v1651_v31 = vpop.eup %1650 }
 0x2c9   :  { %v720_v19 = vmul.f32 %v1651_v31, %v2157_v35  ;;  %v1535_v35 = vld [vmem:[%s2414_s7] sm:$0xff]  ;;  %816 = vmatpush.msra.mxu3 %v771_v7 }
 0x2ca   :  { %803 = vmatpush.bf16.msra.mxu2 %v1535_v35 }
 0x2cb   :  { %817 = vmatpush.msra.mxu3 %v770_v18 }
 0x2cd   :  { %818 = vmatpush.msra.mxu3 %v769_v28 }
 0x2cf   :  { %819 = vmatpush.msra.mxu3 %v768_v62 }
 0x2d1   :  { %820 = vmatpush.msra.mxu3 %v767_v45 }
 0x2d3   :  { %821 = vmatpush.msra.mxu3 %v766_v33 }
 0x2d4   :  { %v659_v44 = vpop.permute.xlu0 %658 }
 0x2d5   :  { %671 = vmatpush.bf16.msra.mxu0 %v659_v44  ;;  %v764_v44 = vld [vmem:[%s2415_s8 + $0x10] sm:$0xff]  ;;  %822 = vmatpush.msra.mxu3 %v765_v39 }
 0x2d7   :  { %823 = vmatpush.msra.mxu3 %v764_v44 }
 0x2d8   :  { %1502 = vmatmul.msk.bf16.vlgmr.msra.gmra.mxu0 %vm250_vm3, %v657_v46 }
 0x2e3   :  { %v713_v59 = vpop.xlane.xlu1 %712 }
 0x2e4   :  { %1652 = vrcp.f32 %v713_v59  ;;  %v763_v59 = vld [vmem:[%s2415_s8 + $0x8] sm:$0xff] }
 0x2e5   :  { %824 = vmatpush.msra.mxu3 %v763_v59 }
 0x2ea   :  { %v1653_v6 = vpop.eup %1652 }
 0x2eb   :  { %v719_v49 = vmul.f32 %v1653_v6, %v2167_v32 }
 0x2ed   :  { %v721_v38 = vpack.c.bf16 %v720_v19, %v719_v49  ;;  %v762_v49 = vld [vmem:[%s2415_s8] sm:$0xff] }
 0x2ee   :  { %825 = vmatpush.msra.mxu3 %v762_v49 }
 0x2ef   :  { %1503 = vmatmul.msk.bf16.vlgmr.msra.gmra.mxu1 %vm250_vm3, %v721_v38 }
 0x329   :  { %v336_v4 = vpop.f32.mrf.mxu0 }
 0x32a   :  { %v354_v50 = vpop.f32.mrf.mxu1 }
 0x32b   :  { %v355_v54 = vadd.f32 %v354_v50, %v336_v4 }
 0x331   :  { %v338_v41 = vpop.f32.mrf.mxu0 }
 0x332   :  { %v356_v11 = vpop.f32.mrf.mxu1 }
 0x333   :  { %v357_v13 = vadd.f32 %v356_v11, %v338_v41 }
 0x339   :  { %v416_v55 = vpop.f32.mrf.mxu0 }
 0x33a   :  { %v421_v0 = vadd.f32 %v416_v55, %v355_v54 }
 0x33b   :  { %v480_v53 = vpop.f32.mrf.mxu1 }
 0x33c   :  { %v485_v42 = vadd.f32 %v480_v53, %v421_v0  ;;  %v778_v53 = vld [vmem:[%s2416_s9] sm:$0xf] }
 0x33f   :  { %v609_v8 = vpop.f32.mrf.mxu3 }
 0x341   :  { %v418_v32 = vpop.f32.mrf.mxu0 }
 0x342   :  { %v422_v9 = vadd.f32 %v418_v32, %v357_v13 }
 0x343   :  { %v482_v12 = vpop.f32.mrf.mxu1 }
 0x344   :  { %v486_v16 = vadd.f32 %v482_v12, %v422_v9 }
 0x347   :  { %v611_v30 = vpop.f32.mrf.mxu3 }
 0x348   :  { %v545_v63 = vpop.f32.mrf.mxu2 }
 0x349   :  { %v550_v21 = vadd.f32 %v545_v63, %v485_v42 }
 0x34b   :  { %v614_v47 = vadd.f32 %v609_v8, %v550_v21 }
 0x350   :  { %v547_v15 = vpop.f32.mrf.mxu2 }
 0x351   :  { %v551_v22 = vadd.f32 %v547_v15, %v486_v16 }
 0x353   :  { %v615_v34 = vadd.f32 %v611_v30, %v551_v22 }
 0x355   :  { %v673_v1 = vpop.f32.mrf.mxu0 }
 0x356   :  { %v678_v27 = vadd.f32 %v673_v1, %v614_v47 }
 0x35d   :  { %v675_v14 = vpop.f32.mrf.mxu0 }
 0x35e   :  { %v679_v51 = vadd.f32 %v675_v14, %v615_v34 }
 0x36c   :  { %v737_v20 = vpop.f32.mrf.mxu1 }
 0x36d   :  { %v742_v36 = vadd.f32 %v737_v20, %v678_v27 }
 0x36f   :  { %v748_v48 = vmul.f32 %v1584_v37, %v742_v36 }
 0x371   :  { %v754_v40 = vadd.f32 %v1585_v3, %v748_v48 }
 0x373   :  { %v756_v31 = vmax.f32 %v754_v40, 0.0 }
 0x374   :  { %v739_v29 = vpop.f32.mrf.mxu1 }
 0x375   :  { %v743_v5 = vadd.f32 %v739_v29, %v679_v51 }
 0x377   :  { %v749_v43 = vmul.f32 %v1584_v37, %v743_v5 }
 0x379   :  { %v755_v46 = vadd.f32 %v1585_v3, %v749_v43 }
 0x37b   :  { %v757_v6 = vmax.f32 %v755_v46, 0.0 }
 0x37d   :  { %v779_v19 = vpack.c.bf16 %v757_v6, %v756_v31 }
 0x37f   :  { %1512 = vmatmul.msk.bf16.vlgmr.msra.gmra.mxu2 %vm792_vm5, %v779_v19 }
 0x402   :  { %v805_v38 = vpop.f32.mrf.mxu2 }
 0x403   :  { %826 = vmatmul.f32.vlgmr.msra.gmra.mxu3 %v805_v38  ;;  %v853_v4 = vpack.c.bf16 %v805_v38, %v805_v38 }
 0x405   :  { %v943_v11 = vunpack.c.l.b16 %v853_v4 }
 0x40a   :  { %v807_v50 = vpop.f32.mrf.mxu2 }
 0x40b   :  { %v854_v41 = vpack.c.bf16 %v807_v50, %v807_v50  ;;  %829 = vmatmul.f32.gmra.mxu3 %v807_v50  ;;  %847 = vmatpush.xpose.msrb.mxu0 %v807_v50 }
 0x40d   :  { %v944_v55 = vunpack.c.l.b16 %v854_v41 }
 0x40f   :  { %v2256_v52 = vpack.c.b16 %v944_v55, %v943_v11  ;;  %848 = vmatpush.xpose.msrb.mxu0 %v805_v38 }
 0x411   :  { %977 = vmatpush.bf16.msrb.mxu2 %v2256_v52 }
 0x412   :  { %849 = vmatmul.f32.vlgmr.msrb.gmra.mxu0 %v778_v53 }
 0x486   :  { %v827_v35 = vpop.f32.mrf.mxu3 }
 0x487   :  { %857 = vperm.xlu1 %1570, %v827_v35   ;;  %900 = vperm.xlu0 %1569, %v827_v35  }
 0x48e   :  { %v830_v32 = vpop.f32.mrf.mxu3 }
 0x48f   :  { %1571 = vset.pattern.permute.xlu0 %v1723_v56  ;;  %904 = vperm.xlu2 %1572, %v830_v32   ;;  %v850_v54 = vpop.f32.mrf.mxu0 }
 0x490   :  { %985 = vperm.xlu0 %1571, %v827_v35   ;;  %1579 = vset.pattern.permute.xlu1 %v1724_v57  ;;  %v907_v25 = vperm.slane %v850_v54, 1  ;;  %v865_v42 = vperm.slane %v850_v54, 0  ;;  %v992_v22 = vperm.slane %v850_v54, 2  ;;  %v1056_v14 = vperm.slane %v850_v54, 3 }
 0x497   :  { %1573 = vset.pattern.permute.xlu2 %v1725_v58 }
 0x498   :  { %1576 = vset.pattern.permute.xlu0 %v1727_v2  ;;  %862 = vperm.xlu2 %1573, %v830_v32  }
 0x499   :  { %1053 = vperm.xlu0 %1576, %v830_v32  }
 0x4a0   :  { %1574 = vset.pattern.permute.xlu2 %v1723_v56 }
 0x4a1   :  { %989 = vperm.xlu2 %1574, %v830_v32  }
 0x4a9   :  { %1575 = vset.pattern.permute.xlu2 %v1727_v2 }
 0x4aa   :  { %1049 = vperm.xlu2 %1575, %v827_v35  }
 0x4b2   :  { %1577 = vset.pattern.permute.xlu2 %v1723_v56 }
 0x4e9   :  { %v905_v61 = vpop.permute.xlu2 %904 }
 0x4ea   :  { %v909_v63 = vadd.f32 %v907_v25, %v905_v61 }
 0x4ec   :  { %vm911_vm6 = vcmp.gt.f32.partialorder %v909_v63, 0.0  ;;  %v913_v0 = vmul.f32 0.2, %v909_v63 }
 0x4ee   :  { %v915_v60 = vsel %vm911_vm6, %v909_v63, %v913_v0 }
 0x4ef   :  { %v2270_v23 = vadd.f32 %v915_v60, %v2030_v24 }
 0x4f1   :  { %v921_v12 = vsel %vm250_vm3, %v2270_v23, -inf }
 0x4f2   :  { %922 = vmax.xlane.f32.xlu2 %v921_v12  ;;  %v863_v13 = vpop.permute.xlu2 %862 }
 0x4f3   :  { %v867_v1 = vadd.f32 %v865_v42, %v863_v13 }
 0x4f5   :  { %v871_v15 = vmul.f32 0.2, %v867_v1  ;;  %vm869_vm9 = vcmp.gt.f32.partialorder %v867_v1, 0.0 }
 0x4f7   :  { %v873_v62 = vsel %vm869_vm9, %v867_v1, %v871_v15 }
 0x4f8   :  { %v875_v48 = vadd.f32 %v873_v62, %v2030_v24 }
 0x4f9   :  { %v858_v26 = vpop.permute.xlu1 %857  ;;  %v901_v8 = vpop.permute.xlu0 %900 }
 0x4fa   :  { %v866_v56 = vadd.f32 %v865_v42, %v858_v26  ;;  %v908_v9 = vadd.f32 %v907_v25, %v901_v8  ;;  %v879_v39 = vsel %vm250_vm3, %v875_v48, -inf }
 0x4fb   :  { %v990_v21 = vpop.permute.xlu2 %989 }
 0x4fc   :  { %vm868_vm7 = vcmp.gt.f32.partialorder %v866_v56, 0.0  ;;  %v870_v10 = vmul.f32 0.2, %v866_v56  ;;  %vm910_vm8 = vcmp.gt.f32.partialorder %v908_v9, 0.0  ;;  %v912_v7 = vmul.f32 0.2, %v908_v9 }
 0x4fd   :  { %v994_v36 = vadd.f32 %v992_v22, %v990_v21 }
 0x4fe   :  { %v914_v16 = vsel %vm910_vm8, %v908_v9, %v912_v7  ;;  %v872_v47 = vsel %vm868_vm7, %v866_v56, %v870_v10 }
 0x4ff   :  { %v916_v18 = vadd.f32 %v914_v16, %v1962_v17  ;;  %v874_v20 = vadd.f32 %v872_v47, %v1962_v17  ;;  %v998_v3 = vmul.f32 0.2, %v994_v36  ;;  %vm996_vm11 = vcmp.gt.f32.partialorder %v994_v36, 0.0 }
 0x501   :  { %v918_v27 = vsel %vm250_vm3, %v916_v18, -inf  ;;  %v876_v28 = vsel %vm250_vm3, %v874_v20, -inf  ;;  %v1000_v43 = vsel %vm996_vm11, %v994_v36, %v998_v3 }
 0x502   :  { %v986_v37 = vpop.permute.xlu0 %985  ;;  %919 = vmax.xlane.f32.xlu1 %v918_v27  ;;  %877 = vmax.xlane.f32.xlu0 %v876_v28  ;;  %v1002_v31 = vadd.f32 %v1000_v43, %v2030_v24 }
 0x503   :  { %v993_v30 = vadd.f32 %v992_v22, %v986_v37 }
 0x504   :  { %v1050_v34 = vpop.permute.xlu2 %1049  ;;  %v1006_v38 = vsel %vm250_vm3, %v1002_v31, -inf }
 0x505   :  { %vm995_vm10 = vcmp.gt.f32.partialorder %v993_v30, 0.0  ;;  %v997_v45 = vmul.f32 0.2, %v993_v30  ;;  %v1057_v51 = vadd.f32 %v1056_v14, %v1050_v34 }
 0x507   :  { %v1061_v33 = vmul.f32 0.2, %v1057_v51  ;;  %v999_v29 = vsel %vm995_vm10, %v993_v30, %v997_v45  ;;  %vm1059_vm12 = vcmp.gt.f32.partialorder %v1057_v51, 0.0 }
 0x508   :  { %v1001_v5 = vadd.f32 %v999_v29, %v1962_v17 }
 0x509   :  { %v1063_v46 = vsel %vm1059_vm12, %v1057_v51, %v1061_v33 }
 0x50a   :  { %880 = vmax.xlane.f32.xlu1 %v879_v39  ;;  %v1003_v40 = vsel %vm250_vm3, %v1001_v5, -inf  ;;  %v1065_v19 = vadd.f32 %v1063_v46, %v1962_v17 }
 0x50b   :  { %v1054_v44 = vpop.permute.xlu0 %1053  ;;  %1004 = vmax.xlane.f32.xlu2 %v1003_v40 }
 0x50c   :  { %v1058_v59 = vadd.f32 %v1056_v14, %v1054_v44  ;;  %v1067_v50 = vsel %vm250_vm3, %v1065_v19, -inf }
 0x50e   :  { %vm1060_vm13 = vcmp.gt.f32.partialorder %v1058_v59, 0.0  ;;  %v1062_v6 = vmul.f32 0.2, %v1058_v59 }
 0x510   :  { %v1064_v49 = vsel %vm1060_vm13, %v1058_v59, %v1062_v6 }
 0x511   :  { %v1066_v4 = vadd.f32 %v1064_v49, %v2030_v24 }
 0x512   :  { %1007 = vmax.xlane.f32.xlu1 %v1006_v38 }
 0x513   :  { %1068 = vmax.xlane.f32.xlu2 %v1067_v50  ;;  %v1070_v41 = vsel %vm250_vm3, %v1066_v4, -inf }
 0x514   :  { %1071 = vmax.xlane.f32.xlu0 %v1070_v41 }
 0x565   :  { %v923_v11 = vpop.xlane.xlu2 %922 }
 0x566   :  { %v925_v55 = vsub.f32 %v2270_v23, %v923_v11 }
 0x568   :  { %v928_v53 = vmul.f32 1.442695, %v925_v55 }
 0x56a   :  { %1654 = vpow2.f32 %v928_v53 }
 0x570   :  { %v2289_v35 = vpop.eup %1654 }
 0x571   :  { %v933_v17 = vsel %vm250_vm3, %v2289_v35, 0.0 }
 0x572   :  { %934 = vadd.xlane.f32.xlu2 %v933_v17 }
 0x575   :  { %v920_v32 = vpop.xlane.xlu1 %919  ;;  %v878_v24 = vpop.xlane.xlu0 %877 }
 0x576   :  { %v924_v54 = vsub.f32 %v916_v18, %v920_v32  ;;  %v882_v25 = vsub.f32 %v874_v20, %v878_v24 }
 0x578   :  { %v926_v61 = vmul.f32 1.442695, %v924_v54  ;;  %v884_v63 = vmul.f32 1.442695, %v882_v25 }
 0x57a   :  { %1656 = vpow2.f32 %v926_v61 }
 0x57b   :  { %1658 = vpow2.f32 %v884_v63  ;;  %v1538_v63 = vld [vmem:[%s2419_s12 + $0x8] sm:$0xff] }
 0x57c   :  { %1157 = vmatpush.bf16.msra.mxu2 %v1538_v63 }
 0x57d   :  { %v881_v0 = vpop.xlane.xlu1 %880 }
 0x57e   :  { %v883_v60 = vsub.f32 %v875_v48, %v881_v0  ;;  %v1005_v12 = vpop.xlane.xlu2 %1004 }
 0x57f   :  { %v1009_v23 = vsub.f32 %v1001_v5, %v1005_v12  ;;  %v1133_v12 = vld [vmem:[%s2420_s13 + $0x18] sm:$0xff] }
 0x580   :  { %v1657_v13 = vpop.eup %1656  ;;  %v886_v42 = vmul.f32 1.442695, %v883_v60  ;;  %v1537_v60 = vld [vmem:[%s2419_s12] sm:$0xff]  ;;  %1183 = vmatpush.msrb.mxu3 %v1133_v12 }
 0x581   :  { %v1659_v26 = vpop.eup %1658  ;;  %v1011_v8 = vmul.f32 1.442695, %v1009_v23  ;;  %v930_v1 = vsel %vm250_vm3, %v1657_v13, 0.0  ;;  %1158 = vmatpush.bf16.msra.mxu2 %v1537_v60  ;;  %v1132_v23 = vld [vmem:[%s2420_s13 + $0x10] sm:$0xff] }
 0x582   :  { %1660 = vpow2.f32 %v886_v42  ;;  %v888_v56 = vsel %vm250_vm3, %v1659_v26, 0.0  ;;  %931 = vadd.xlane.f32.xlu1 %v930_v1  ;;  %1184 = vmatpush.msrb.mxu3 %v1132_v23 }
 0x583   :  { %1662 = vpow2.f32 %v1011_v8  ;;  %889 = vadd.xlane.f32.xlu0 %v888_v56 }
 0x585   :  { %v1008_v9 = vpop.xlane.xlu1 %1007 }
 0x586   :  { %v1010_v21 = vsub.f32 %v1002_v31, %v1008_v9  ;;  %v1069_v10 = vpop.xlane.xlu2 %1068 }
 0x587   :  { %v1073_v7 = vsub.f32 %v1065_v19, %v1069_v10  ;;  %v1072_v15 = vpop.xlane.xlu0 %1071 }
 0x588   :  { %v1661_v16 = vpop.eup %1660  ;;  %v1013_v47 = vmul.f32 1.442695, %v1010_v21  ;;  %v1074_v18 = vsub.f32 %v1066_v4, %v1072_v15 }
 0x589   :  { %v1663_v20 = vpop.eup %1662  ;;  %v1075_v22 = vmul.f32 1.442695, %v1073_v7  ;;  %v891_v27 = vsel %vm250_vm3, %v1661_v16, 0.0  ;;  %v1586_v7 = vld [vmem:[%s2417_s10] ss:$0 sm:$0xff] }
 0x58a   :  { %1664 = vpow2.f32 %v1013_v47  ;;  %892 = vadd.xlane.f32.xlu1 %v891_v27  ;;  %946 = vrot.lane.b32.xlu2 %v2256_v52, %s1722_s26  ;;  %v1015_v28 = vsel %vm250_vm3, %v1663_v20, 0.0  ;;  %v1077_v36 = vmul.f32 1.442695, %v1074_v18 }
 0x58b   :  { %1666 = vpow2.f32 %v1075_v22  ;;  %1016 = vadd.xlane.f32.xlu0 %v1015_v28 }
 0x58c   :  { %1668 = vpow2.f32 %v1077_v36 }
 0x590   :  { %v1665_v37 = vpop.eup %1664 }
 0x591   :  { %v1667_v62 = vpop.eup %1666  ;;  %v1018_v30 = vsel %vm250_vm3, %v1665_v37, 0.0 }
 0x592   :  { %1019 = vadd.xlane.f32.xlu1 %v1018_v30  ;;  %v1079_v14 = vsel %vm250_vm3, %v1667_v62, 0.0  ;;  %v1669_v34 = vpop.eup %1668 }
 0x593   :  { %1080 = vadd.xlane.f32.xlu0 %v1079_v14  ;;  %v1082_v45 = vsel %vm250_vm3, %v1669_v34, 0.0 }
 0x59a   :  { %1083 = vadd.xlane.f32.xlu1 %v1082_v45 }
 0x5a7   :  { %1026 = vrot.lane.b32.xlu0 %v2256_v52, %s1721_s25 }
 0x5b3   :  { %1090 = vrot.lane.b32.xlu1 %v2256_v52, %s1720_s22 }
 0x5e5   :  { %v935_v51 = vpop.xlane.xlu2 %934 }
 0x5e6   :  { %1670 = vrcp.f32 %v935_v51 }
 0x5ec   :  { %v1671_v29 = vpop.eup %1670 }
 0x5ed   :  { %v947_v48 = vpop.permute.xlu2 %946  ;;  %v939_v39 = vmul.f32 %v1671_v29, %v2289_v35 }
 0x5ee   :  { %959 = vmatpush.bf16.msrb.mxu1 %v947_v48 }
 0x5f5   :  { %v932_v3 = vpop.xlane.xlu1 %931 }
 0x5f6   :  { %1672 = vrcp.f32 %v932_v3  ;;  %v890_v33 = vpop.xlane.xlu0 %889 }
 0x5f7   :  { %1674 = vrcp.f32 %v890_v33 }
 0x5fc   :  { %v1673_v5 = vpop.eup %1672 }
 0x5fd   :  { %v938_v40 = vmul.f32 %v1673_v5, %v1657_v13  ;;  %v893_v43 = vpop.xlane.xlu1 %892  ;;  %v1675_v46 = vpop.eup %1674  ;;  %v1131_v13 = vld [vmem:[%s2420_s13 + $0x8] sm:$0xff] }
 0x5fe   :  { %1676 = vrcp.f32 %v893_v43  ;;  %v896_v59 = vmul.f32 %v1675_v46, %v1659_v26  ;;  %v1017_v19 = vpop.xlane.xlu0 %1016  ;;  %1185 = vmatpush.msrb.mxu3 %v1131_v13 }
 0x5ff   :  { %v940_v44 = vpack.c.bf16 %v939_v39, %v938_v40  ;;  %v1134_v39 = vld [vmem:[%s2421_s14] sm:$0xf] }
 0x601   :  { %1513 = vmatmul.msk.bf16.vlgmr.msrb.gmra.mxu1 %vm250_vm3, %v940_v44 }
 0x604   :  { %v1677_v52 = vpop.eup %1676 }
 0x605   :  { %v897_v31 = vmul.f32 %v1677_v52, %v1661_v16  ;;  %v1020_v49 = vpop.xlane.xlu1 %1019 }
 0x606   :  { %1678 = vrcp.f32 %v1020_v49  ;;  %v1081_v38 = vpop.xlane.xlu0 %1080 }
 0x607   :  { %v898_v6 = vpack.c.bf16 %v897_v31, %v896_v59  ;;  %1680 = vrcp.f32 %v1017_v19  ;;  %v1718_v19 = vld [vmem:[%s2411_s1] sm:$0xff] }
 0x609   :  { %1514 = vmatmul.msk.bf16.vlgmr.msrb.gmra.mxu2 %vm250_vm3, %v898_v6 }
 0x60c   :  { %v1679_v4 = vpop.eup %1678 }
 0x60d   :  { %v1681_v50 = vpop.eup %1680  ;;  %v1024_v41 = vmul.f32 %v1679_v4, %v1665_v37  ;;  %v1084_v11 = vpop.xlane.xlu1 %1083 }
 0x60e   :  { %v1023_v55 = vmul.f32 %v1681_v50, %v1663_v20  ;;  %1682 = vrcp.f32 %v1084_v11  ;;  %v1587_v20 = vld [vmem:[%s2418_s11] ss:$0 sm:$0xff] }
 0x60f   :  { %1684 = vrcp.f32 %v1081_v38 }
 0x610   :  { %v1025_v35 = vpack.c.bf16 %v1024_v41, %v1023_v55 }
 0x614   :  { %v1683_v17 = vpop.eup %1682 }
 0x615   :  { %v1685_v32 = vpop.eup %1684  ;;  %v1088_v24 = vmul.f32 %v1683_v17, %v1669_v34  ;;  %v1130_v34 = vld [vmem:[%s2420_s13] sm:$0xff] }
 0x616   :  { %v1087_v54 = vmul.f32 %v1685_v32, %v1667_v62  ;;  %1186 = vmatpush.msrb.mxu3 %v1130_v34 }
 0x618   :  { %v1089_v61 = vpack.c.bf16 %v1088_v24, %v1087_v54 }
 0x619   :  { %v1027_v53 = vpop.permute.xlu0 %1026 }
 0x61a   :  { %1039 = vmatpush.bf16.msra.mxu0 %v1027_v53 }
 0x61d   :  { %1515 = vmatmul.msk.bf16.vlgmr.msra.gmra.mxu0 %vm250_vm3, %v1025_v35 }
 0x625   :  { %v1091_v25 = vpop.permute.xlu1 %1090 }
 0x626   :  { %1103 = vmatpush.bf16.msra.mxu1 %v1091_v25 }
 0x629   :  { %1516 = vmatmul.msk.bf16.vlgmr.msra.gmra.mxu1 %vm250_vm3, %v1089_v61 }
 0x67e   :  { %v961_v0 = vpop.f32.mrf.mxu1 }
 0x686   :  { %v963_v42 = vpop.f32.mrf.mxu1 }
 0x68c   :  { %v979_v26 = vpop.f32.mrf.mxu2 }
 0x68d   :  { %v980_v1 = vadd.f32 %v979_v26, %v961_v0 }
 0x694   :  { %v981_v21 = vpop.f32.mrf.mxu2 }
 0x695   :  { %v982_v16 = vadd.f32 %v981_v21, %v963_v42  ;;  %v1719_v21 = vld [vmem:[%s2411_s1 + $0x8] sm:$0xff]  ;;  %s1731_s1 = smov 112  }
 0x69a   :  { %v1041_v8 = vpop.f32.mrf.mxu0 }
 0x69b   :  { %v1046_v9 = vadd.f32 %v1041_v8, %v980_v1 }
 0x6a2   :  { %v1043_v15 = vpop.f32.mrf.mxu0 }
 0x6a3   :  { %v1047_v47 = vadd.f32 %v1043_v15, %v982_v16 }
 0x6a6   :  { %v1105_v56 = vpop.f32.mrf.mxu1 }
 0x6a7   :  { %v1110_v10 = vadd.f32 %v1105_v56, %v1046_v9 }
 0x6a9   :  { %v1116_v18 = vmul.f32 %v1586_v7, %v1110_v10 }
 0x6ab   :  { %v1122_v28 = vadd.f32 %v1587_v20, %v1116_v18 }
 0x6ad   :  { %v1124_v62 = vmax.f32 %v1122_v28, 0.0 }
 0x6ae   :  { %v1107_v22 = vpop.f32.mrf.mxu1 }
 0x6af   :  { %v1111_v27 = vadd.f32 %v1107_v22, %v1047_v47 }
 0x6b1   :  { %v1117_v36 = vmul.f32 %v1586_v7, %v1111_v27 }
 0x6b3   :  { %v1123_v37 = vadd.f32 %v1587_v20, %v1117_v36 }
 0x6b5   :  { %v1125_v30 = vmax.f32 %v1123_v37, 0.0 }
 0x6b7   :  { %v1135_v14 = vpack.c.bf16 %v1125_v30, %v1124_v62 }
 0x6b9   :  { %1525 = vmatmul.msk.bf16.vlgmr.msra.gmra.mxu2 %vm792_vm5, %v1135_v14 }
 0x73c   :  { %v1160_v45 = vpop.f32.mrf.mxu2 }
 0x73d   :  { %1526 = vmatmul.msk.f32.vlgmr.msrb.gmra.mxu3 %vm792_vm5, %v1160_v45  ;;  %v1217_v51 = vpack.c.bf16 %v1160_v45, %v1160_v45 }
 0x73f   :  { %v1307_v33 = vunpack.c.l.b16 %v1217_v51 }
 0x744   :  { %v1162_v48 = vpop.f32.mrf.mxu2 }
 0x745   :  { %v1218_v3 = vpack.c.bf16 %v1162_v48, %v1162_v48  ;;  %1527 = vmatmul.msk.f32.gmra.mxu3 %vm792_vm5, %v1162_v48  ;;  %1528 = vmatpush.xpose.msk.msrb.mxu0 %vm792_vm5, %v1162_v48 }
 0x747   :  { %v1308_v29 = vunpack.c.l.b16 %v1218_v3 }
 0x749   :  { %v2339_v5 = vpack.c.b16 %v1308_v29, %v1307_v33  ;;  %1529 = vmatpush.xpose.msk.msrb.mxu0 %vm792_vm5, %v1160_v45 }
 0x74b   :  { %1341 = vmatpush.bf16.msrb.mxu1 %v2339_v5 }
 0x74c   :  { %1530 = vmatmul.msk.f32.vlgmr.msrb.gmra.mxu0 %vm792_vm5, %v1134_v39 }
 0x7c0   :  { %v1188_v40 = vpop.f32.mrf.mxu3 }
 0x7c1   :  { %1264 = vperm.xlu1 %1579, %v1188_v40   ;;  %1413 = vperm.xlu0 %1576, %v1188_v40  }
 0x7c2   :  { %1349 = vperm.xlu2 %1577, %v1188_v40  }
 0x7c8   :  { %v1191_v43 = vpop.f32.mrf.mxu3 }
 0x7c9   :  { %1578 = vset.pattern.permute.xlu0 %v1725_v58  ;;  %v1214_v44 = vpop.f32.mrf.mxu0 }
 0x7ca   :  { %1353 = vperm.xlu2 %1577, %v1191_v43   ;;  %1221 = vperm.xlu0 %1578, %v1188_v40   ;;  %v1356_v46 = vperm.slane %v1214_v44, 2  ;;  %v1420_v38 = vperm.slane %v1214_v44, 3  ;;  %v1271_v4 = vperm.slane %v1214_v44, 1  ;;  %v1229_v11 = vperm.slane %v1214_v44, 0 }
 0x7d2   :  { %1580 = vset.pattern.permute.xlu2 %v1727_v2  ;;  %1583 = vset.pattern.permute.xlu0 %v1727_v2 }
 0x7d3   :  { %1417 = vperm.xlu2 %1580, %v1191_v43  }
 0x7db   :  { %1581 = vset.pattern.permute.xlu2 %v1725_v58 }
 0x7dc   :  { %1226 = vperm.xlu2 %1581, %v1191_v43  }
 0x7e4   :  { %1582 = vset.pattern.permute.xlu2 %v1724_v57 }
 0x7e5   :  { %1268 = vperm.xlu2 %1582, %v1191_v43  }
 0x81c   :  { %v1350_v52 = vpop.permute.xlu2 %1349 }
 0x81d   :  { %v1357_v59 = vadd.f32 %v1356_v46, %v1350_v52 }
 0x81f   :  { %vm1359_vm14 = vcmp.gt.f32.partialorder %v1357_v59, 0.0  ;;  %v1361_v31 = vmul.f32 0.2, %v1357_v59 }
 0x821   :  { %v1363_v6 = vsel %vm1359_vm14, %v1357_v59, %v1361_v31 }
 0x822   :  { %v2355_v49 = vadd.f32 %v1718_v19, %v1363_v6 }
 0x824   :  { %v1354_v2 = vpop.permute.xlu2 %1353  ;;  %v1367_v58 = vsel %vm250_vm3, %v2355_v49, -inf }
 0x825   :  { %1368 = vmax.xlane.f32.xlu1 %v1367_v58  ;;  %v1358_v1 = vadd.f32 %v1356_v46, %v1354_v2 }
 0x827   :  { %v1362_v15 = vmul.f32 0.2, %v1358_v1  ;;  %vm1360_vm6 = vcmp.gt.f32.partialorder %v1358_v1, 0.0 }
 0x829   :  { %v1364_v36 = vsel %vm1360_vm6, %v1358_v1, %v1362_v15 }
 0x82a   :  { %v1366_v37 = vadd.f32 %v1719_v21, %v1364_v36 }
 0x82c   :  { %v1370_v30 = vsel %vm250_vm3, %v1366_v37, -inf }
 0x82d   :  { %v1418_v57 = vpop.permute.xlu2 %1417 }
 0x82e   :  { %v1422_v55 = vadd.f32 %v1420_v38, %v1418_v57 }
 0x830   :  { %vm1424_vm2 = vcmp.gt.f32.partialorder %v1422_v55, 0.0  ;;  %v1426_v25 = vmul.f32 0.2, %v1422_v55 }
 0x832   :  { %v1428_v26 = vsel %vm1424_vm2, %v1422_v55, %v1426_v25 }
 0x833   :  { %v1265_v50 = vpop.permute.xlu1 %1264  ;;  %v1414_v41 = vpop.permute.xlu0 %1413  ;;  %v1430_v10 = vadd.f32 %v1719_v21, %v1428_v26 }
 0x834   :  { %v1272_v53 = vadd.f32 %v1271_v4, %v1265_v50  ;;  %v1421_v35 = vadd.f32 %v1420_v38, %v1414_v41 }
 0x835   :  { %v1434_v20 = vsel %vm250_vm3, %v1430_v10, -inf }
 0x836   :  { %vm1274_vm15 = vcmp.gt.f32.partialorder %v1272_v53, 0.0  ;;  %v1276_v17 = vmul.f32 0.2, %v1272_v53  ;;  %vm1423_vm0 = vcmp.gt.f32.partialorder %v1421_v35, 0.0  ;;  %v1425_v32 = vmul.f32 0.2, %v1421_v35  ;;  %v1227_v24 = vpop.permute.xlu2 %1226 }
 0x837   :  { %v1231_v54 = vadd.f32 %v1229_v11, %v1227_v24 }
 0x838   :  { %v1278_v61 = vsel %vm1274_vm15, %v1272_v53, %v1276_v17  ;;  %v1427_v63 = vsel %vm1423_vm0, %v1421_v35, %v1425_v32 }
 0x839   :  { %vm1233_vm4 = vcmp.gt.f32.partialorder %v1231_v54, 0.0  ;;  %v1235_v0 = vmul.f32 0.2, %v1231_v54  ;;  %v1280_v60 = vadd.f32 %v1718_v19, %v1278_v61  ;;  %v1429_v12 = vadd.f32 %v1718_v19, %v1427_v63 }
 0x83b   :  { %v1282_v23 = vsel %vm250_vm3, %v1280_v60, -inf  ;;  %v1431_v13 = vsel %vm250_vm3, %v1429_v12, -inf  ;;  %v1237_v8 = vsel %vm1233_vm4, %v1231_v54, %v1235_v0 }
 0x83c   :  { %v1222_v42 = vpop.permute.xlu0 %1221  ;;  %1283 = vmax.xlane.f32.xlu1 %v1282_v23  ;;  %1432 = vmax.xlane.f32.xlu2 %v1431_v13  ;;  %v1239_v7 = vadd.f32 %v1719_v21, %v1237_v8 }
 0x83d   :  { %v1230_v56 = vadd.f32 %v1229_v11, %v1222_v42 }
 0x83e   :  { %v1243_v22 = vsel %vm250_vm3, %v1239_v7, -inf }
 0x83f   :  { %vm1232_vm5 = vcmp.gt.f32.partialorder %v1230_v56, 0.0  ;;  %v1234_v9 = vmul.f32 0.2, %v1230_v56  ;;  %v1269_v47 = vpop.permute.xlu2 %1268 }
 0x840   :  { %v1273_v28 = vadd.f32 %v1271_v4, %v1269_v47 }
 0x841   :  { %v1236_v16 = vsel %vm1232_vm5, %v1230_v56, %v1234_v9 }
 0x842   :  { %v1238_v18 = vadd.f32 %v1718_v19, %v1236_v16  ;;  %v1277_v62 = vmul.f32 0.2, %v1273_v28  ;;  %vm1275_vm7 = vcmp.gt.f32.partialorder %v1273_v28, 0.0 }
 0x844   :  { %1435 = vmax.xlane.f32.xlu1 %v1434_v20  ;;  %1244 = vmax.xlane.f32.xlu2 %v1243_v22  ;;  %v1240_v27 = vsel %vm250_vm3, %v1238_v18, -inf  ;;  %v1279_v14 = vsel %vm1275_vm7, %v1273_v28, %v1277_v62 }
 0x845   :  { %1241 = vmax.xlane.f32.xlu0 %v1240_v27  ;;  %v1281_v34 = vadd.f32 %v1719_v21, %v1279_v14 }
 0x847   :  { %v1285_v45 = vsel %vm250_vm3, %v1281_v34, -inf }
 0x84d   :  { %1371 = vmax.xlane.f32.xlu0 %v1370_v30 }
 0x855   :  { %1286 = vmax.xlane.f32.xlu0 %v1285_v45 }
 0x898   :  { %v1369_v51 = vpop.xlane.xlu1 %1368 }
 0x899   :  { %v1373_v48 = vsub.f32 %v2355_v49, %v1369_v51 }
 0x89b   :  { %v1375_v3 = vmul.f32 1.442695, %v1373_v48 }
 0x89d   :  { %1686 = vpow2.f32 %v1375_v3 }
 0x8a3   :  { %v2370_v33 = vpop.eup %1686 }
 0x8a4   :  { %v1379_v29 = vsel %vm250_vm3, %v2370_v33, 0.0 }
 0x8a5   :  { %1380 = vadd.xlane.f32.xlu2 %v1379_v29 }
 0x8af   :  { %v1284_v39 = vpop.xlane.xlu1 %1283  ;;  %v1433_v40 = vpop.xlane.xlu2 %1432 }
 0x8b0   :  { %v1288_v43 = vsub.f32 %v1280_v60, %v1284_v39  ;;  %v1437_v44 = vsub.f32 %v1429_v12, %v1433_v40 }
 0x8b2   :  { %v1290_v46 = vmul.f32 1.442695, %v1288_v43  ;;  %v1439_v52 = vmul.f32 1.442695, %v1437_v44 }
 0x8b4   :  { %1688 = vpow2.f32 %v1290_v46 }
 0x8b5   :  { %1690 = vpow2.f32 %v1439_v52 }
 0x8b7   :  { %v1436_v59 = vpop.xlane.xlu1 %1435  ;;  %v1245_v31 = vpop.xlane.xlu2 %1244 }
 0x8b8   :  { %v1438_v6 = vsub.f32 %v1430_v10, %v1436_v59  ;;  %v1247_v19 = vsub.f32 %v1239_v7, %v1245_v31  ;;  %v1242_v49 = vpop.xlane.xlu0 %1241 }
 0x8b9   :  { %v1246_v2 = vsub.f32 %v1238_v18, %v1242_v49  ;;  %v1589_v49 = vld [vmem:[%s2423_s16] ss:$0 sm:$0xff] }
 0x8ba   :  { %v2374_v58 = vpop.eup %1688  ;;  %v1441_v57 = vmul.f32 1.442695, %v1438_v6  ;;  %v1250_v38 = vmul.f32 1.442695, %v1247_v19  ;;  %v1588_v6 = vld [vmem:[%s2422_s15] ss:$0 sm:$0xff] }
 0x8bb   :  { %v1691_v4 = vpop.eup %1690  ;;  %v1248_v50 = vmul.f32 1.442695, %v1246_v2  ;;  %v1294_v41 = vsel %vm250_vm3, %v2374_v58, 0.0 }
 0x8bc   :  { %1692 = vpow2.f32 %v1441_v57  ;;  %1295 = vadd.xlane.f32.xlu2 %v1294_v41  ;;  %v1443_v11 = vsel %vm250_vm3, %v1691_v4, 0.0 }
 0x8bd   :  { %1694 = vpow2.f32 %v1250_v38  ;;  %1444 = vadd.xlane.f32.xlu0 %v1443_v11 }
 0x8be   :  { %1696 = vpow2.f32 %v1248_v50 }
 0x8c0   :  { %v1372_v55 = vpop.xlane.xlu0 %1371 }
 0x8c1   :  { %v1374_v53 = vsub.f32 %v1366_v37, %v1372_v55 }
 0x8c2   :  { %v1693_v35 = vpop.eup %1692 }
 0x8c3   :  { %v1695_v17 = vpop.eup %1694  ;;  %v1377_v32 = vmul.f32 1.442695, %v1374_v53  ;;  %v1446_v24 = vsel %vm250_vm3, %v1693_v35, 0.0 }
 0x8c4   :  { %v1697_v54 = vpop.eup %1696  ;;  %1447 = vadd.xlane.f32.xlu2 %v1446_v24  ;;  %v1255_v25 = vsel %vm250_vm3, %v1695_v17, 0.0 }
 0x8c5   :  { %1698 = vpow2.f32 %v1377_v32  ;;  %1256 = vadd.xlane.f32.xlu0 %v1255_v25  ;;  %v1252_v61 = vsel %vm250_vm3, %v1697_v54, 0.0 }
 0x8c6   :  { %1253 = vadd.xlane.f32.xlu1 %v1252_v61 }
 0x8c8   :  { %v1287_v63 = vpop.xlane.xlu0 %1286 }
 0x8c9   :  { %v1289_v0 = vsub.f32 %v1281_v34, %v1287_v63 }
 0x8cb   :  { %v1699_v60 = vpop.eup %1698  ;;  %v1292_v12 = vmul.f32 1.442695, %v1289_v0 }
 0x8cc   :  { %v1382_v23 = vsel %vm250_vm3, %v1699_v60, 0.0 }
 0x8cd   :  { %1700 = vpow2.f32 %v1292_v12 }
 0x8ce   :  { %1383 = vadd.xlane.f32.xlu1 %v1382_v23 }
 0x8d3   :  { %v1701_v13 = vpop.eup %1700 }
 0x8d4   :  { %v1297_v42 = vsel %vm250_vm3, %v1701_v13, 0.0 }
 0x8d6   :  { %1298 = vadd.xlane.f32.xlu1 %v1297_v42 }
 0x8d9   :  { %1390 = vrot.lane.b32.xlu0 %v2339_v5, %s1731_s1 }
 0x8dc   :  { %1454 = vrot.lane.b32.xlu2 %v2339_v5, %s1732_s20 }
 0x8ef   :  { %1310 = vrot.lane.b32.xlu1 %v2339_v5, %s1733_s3 }
 0x918   :  { %v1381_v26 = vpop.xlane.xlu2 %1380 }
 0x92f   :  { %v1296_v8 = vpop.xlane.xlu2 %1295 }
 0x930   :  { %v1445_v1 = vpop.xlane.xlu0 %1444 }
 0x931   :  { %1702 = vrcp.f32 %v1445_v1 }
 0x937   :  { %v1448_v56 = vpop.xlane.xlu2 %1447  ;;  %v1703_v10 = vpop.eup %1702 }
 0x938   :  { %v1257_v9 = vpop.xlane.xlu0 %1256  ;;  %1704 = vrcp.f32 %v1448_v56  ;;  %v1451_v16 = vmul.f32 %v1703_v10, %v1691_v4 }
 0x939   :  { %1706 = vrcp.f32 %v1257_v9  ;;  %v1254_v21 = vpop.xlane.xlu1 %1253 }
 0x93a   :  { %1708 = vrcp.f32 %v1254_v21 }
 0x93b   :  { %1710 = vrcp.f32 %v1381_v26 }
 0x93e   :  { %v1705_v7 = vpop.eup %1704 }
 0x93f   :  { %v1707_v15 = vpop.eup %1706  ;;  %v1452_v47 = vmul.f32 %v1705_v7, %v1693_v35  ;;  %v1455_v18 = vpop.permute.xlu2 %1454 }
 0x940   :  { %v1709_v20 = vpop.eup %1708  ;;  %v1261_v22 = vmul.f32 %v1707_v15, %v1695_v17  ;;  %1467 = vmatpush.bf16.msra.mxu3 %v1455_v18 }
 0x941   :  { %v1453_v5 = vpack.c.bf16 %v1452_v47, %v1451_v16  ;;  %v1260_v27 = vmul.f32 %v1709_v20, %v1697_v54  ;;  %v1384_v28 = vpop.xlane.xlu1 %1383  ;;  %v1711_v37 = vpop.eup %1710 }
 0x942   :  { %1712 = vrcp.f32 %v1384_v28  ;;  %v1387_v14 = vmul.f32 %v1711_v37, %v2370_v33 }
 0x943   :  { %v1262_v36 = vpack.c.bf16 %v1261_v22, %v1260_v27  ;;  %1534 = vmatmul.msk.bf16.vlgmr.msra.gmra.mxu3 %vm250_vm3, %v1453_v5 }
 0x945   :  { %1532 = vmatmul.msk.bf16.vlgmr.msrb.gmra.mxu1 %vm250_vm3, %v1262_v36 }
 0x948   :  { %v1713_v62 = vpop.eup %1712 }
 0x949   :  { %v1388_v30 = vmul.f32 %v1713_v62, %v1699_v60  ;;  %v1299_v51 = vpop.xlane.xlu1 %1298 }
 0x94a   :  { %1714 = vrcp.f32 %v1299_v51 }
 0x94b   :  { %v1391_v34 = vpop.permute.xlu0 %1390  ;;  %v1389_v45 = vpack.c.bf16 %v1388_v30, %v1387_v14  ;;  %1716 = vrcp.f32 %v1296_v8 }
 0x94c   :  { %1403 = vmatpush.bf16.msrb.mxu2 %v1391_v34 }
 0x94f   :  { %1533 = vmatmul.msk.bf16.vlgmr.msrb.gmra.mxu2 %vm250_vm3, %v1389_v45 }
 0x950   :  { %v1715_v48 = vpop.eup %1714 }
 0x951   :  { %v1717_v3 = vpop.eup %1716  ;;  %v1303_v29 = vmul.f32 %v1715_v48, %v1701_v13 }
 0x952   :  { %v1302_v39 = vmul.f32 %v1717_v3, %v2374_v58 }
 0x954   :  { %v1304_v43 = vpack.c.bf16 %v1303_v29, %v1302_v39 }
 0x961   :  { %v1311_v40 = vpop.permute.xlu1 %1310 }
 0x962   :  { %1323 = vmatpush.bf16.msra.mxu0 %v1311_v40 }
 0x965   :  { %1531 = vmatmul.msk.bf16.vlgmr.msra.gmra.mxu0 %vm250_vm3, %v1304_v43 }
 0x9c2   :  { %v1343_v44 = vpop.f32.mrf.mxu1 }
 0x9c6   :  { %v1469_v59 = vpop.f32.mrf.mxu3 }
 0x9ca   :  { %v1345_v58 = vpop.f32.mrf.mxu1 }
 0x9ce   :  { %v1471_v11 = vpop.f32.mrf.mxu3 }
 0x9d2   :  { %v1405_v33 = vpop.f32.mrf.mxu2 }
 0x9da   :  { %v1407_v50 = vpop.f32.mrf.mxu2 }
 0x9e2   :  { %v1325_v46 = vpop.f32.mrf.mxu0 }
 0x9e3   :  { %v1344_v52 = vadd.f32 %v1343_v44, %v1325_v46 }
 0x9e5   :  { %v1410_v31 = vadd.f32 %v1405_v33, %v1344_v52 }
 0x9e7   :  { %v1474_v19 = vadd.f32 %v1469_v59, %v1410_v31 }
 0x9e9   :  { %v1480_v2 = vmul.f32 %v1588_v6, %v1474_v19 }
 0x9ea   :  { %v1327_v57 = vpop.f32.mrf.mxu0 }
 0x9eb   :  { %v1486_v38 = vadd.f32 %v1589_v49, %v1480_v2  ;;  %v1346_v4 = vadd.f32 %v1345_v58, %v1327_v57 }
 0x9ed   :  { %1488 = vst.msk [vmem:[%s2424_s17] sm:$0xff] %vm102_vm1, %v1486_v38  ;;  %v1411_v41 = vadd.f32 %v1407_v50, %v1346_v4 }
 0x9ef   :  { %v1475_v55 = vadd.f32 %v1471_v11, %v1411_v41 }
 0x9f1   :  { %v1481_v53 = vmul.f32 %v1588_v6, %v1475_v55 }
 0x9f3   :  { %v1487_v35 = vadd.f32 %v1589_v49, %v1481_v53 }
 0x9f5   :  { %1489 = vst.msk [vmem:[%s2424_s17 + $0x8] sm:$0xff] %vm102_vm1, %v1487_v35 }

</bundles_post_ra>
